<compile_context>
chip_gen: v7x
topology: tpu7x:2x2x1
jax: 0.10.0
libtpu: 0.0.40
codegen_flags: <defaults>
</compile_context>

<pallas_src>
import jax
import jax.numpy as jnp
from jax.experimental import pallas as pl
from jax.experimental.pallas import tpu as pltpu

# ----------------------------- configuration -------------------------------
B = 8              # batch (multiple of 8 -> sublane friendly)
S = 16             # asr sequence length
VOCAB = 100        # toy vocab for the synthetic BERT embedding table
D_BERT = 32        # asr_embedding_model.text_embedding_dim
ASR_DIM = 32       # asr_embedding_dim
C_IN = 4           # audio channels
H_IMG = 16
W_IMG = 16
KSZ = 3            # conv kernel size
C_MID = 32         # conv stem output channels ("audio_embedding_dim" stand-in)
N_CLASSES = 2
P = H_IMG * W_IMG            # 256 spatial positions (stride-1 SAME conv)
K_PATCH = KSZ * KSZ * C_IN   # 36
K_PAD = 48                   # zero-padded contraction dim (multiple of 16 for bf16 packing)

N_CHUNKS = 2                 # grid steps over conv columns (>=2 for DMA overlap, <=4 for overhead)
CHUNK_B = B // N_CHUNKS      # batches per chunk
CHUNK_COLS = CHUNK_B * P     # lane-dense columns per chunk (1024 = 8 x 128)
# NOTE(perf): if the real BERT encoder / MobileNetV2 are plugged in later, keep
# D_BERT / ASR_DIM / C_MID multiples of 128 and grow N_CHUNKS so one chunk's
# double-buffered patches stay well under v7x's 32 MiB scoped VMEM limit.


# ----------------------------- fused Pallas kernel --------------------------
def fused_kernel(gate_ref,                                   # SMEM (1, 2) softmax(gate)
                 mask_ref,                                   # (B, S) f32 attention mask
                 emb_ref,                                    # (B, S, D_BERT) raw bert embeddings
                 w1_ref, b1_ref, w2_ref, b2_ref, w3_ref, b3_ref,   # asr MLP (f32)
                 pT_ref,                                     # (K_PAD, CHUNK_COLS) im2col^T chunk (bf16)
                 wcT_ref, bcT_ref,                           # (C_MID, K_PAD) bf16 / (C_MID, 1) f32
                 wf_ref, bf_ref,                             # classifier head (f32)
                 o_ref,                                      # (B, 2*N_CLASSES) output slab
                 acc_ref):                                   # VMEM (N_CHUNKS, C_MID, CHUNK_B) GAP acc
    i = pl.program_id(0)

    # ---- audio branch chunk: lane-dense conv-as-matmul (bf16 MXU, f32 acc) ----
    feat_t = jnp.dot(wcT_ref[...], pT_ref[...],
                     preferred_element_type=jnp.float32)              # (C_MID, CHUNK_COLS)
    feat_t = jnp.maximum(feat_t + bcT_ref[...], 0.0)                  # fused bias + ReLU (f32)

    # fused partial global-average-pool: per-batch lane-segment sums, no feat slab kept
    part = jnp.concatenate(
        [jnp.sum(feat_t[:, bb * P:(bb + 1) * P], axis=-1, keepdims=True)
         for bb in range(CHUNK_B)], axis=-1)                          # (C_MID, CHUNK_B)
    acc_ref[i] = part                                                 # chunk i -> batches [i*CHUNK_B, ...)

    # ---- epilogue on last chunk: ASR branch, audio head, gate fusion ----
    @pl.when(i == pl.num_programs(0) - 1)
    def _():
        # ASR text branch: masked mean pool (mask applied in-kernel) + 3-layer MLP (f32)
        m = mask_ref[...]                                              # (B, S)
        denom = jnp.maximum(jnp.sum(m, axis=1, keepdims=True), 1.0)    # (B, 1)
        pooled_t = jnp.sum(emb_ref[...] * m[:, :, None], axis=1) / denom   # (B, D_BERT)
        h = jnp.maximum(jnp.dot(pooled_t, w1_ref[...],
                                preferred_element_type=jnp.float32) + b1_ref[...], 0.0)
        h = jnp.maximum(jnp.dot(h, w2_ref[...],
                                preferred_element_type=jnp.float32) + b2_ref[...], 0.0)
        asr = jnp.dot(h, w3_ref[...],
                      preferred_element_type=jnp.float32) + b3_ref[...]      # (B, 2)

        # audio head: finish GAP (mean) + classifier
        pooled_a_t = jnp.concatenate([acc_ref[c] for c in range(N_CHUNKS)],
                                     axis=-1)                          # (C_MID, B)
        pooled_a = pooled_a_t.T * (1.0 / P)                            # (B, C_MID)
        main = jnp.dot(pooled_a, wf_ref[...],
                       preferred_element_type=jnp.float32) + bf_ref[...]     # (B, 2)

        # gate fusion: cat(main, asr, dim=1) * softmax(gate), sum(dim=1)
        # two direct slice stores (no lane concatenate)
        g_main = gate_ref[0, 0]
        g_asr = gate_ref[0, 1]
        o_ref[:, :N_CLASSES] = main * g_main + asr * g_asr
        o_ref[:, N_CLASSES:] = asr


def fused_forward(gate, mask_f32, emb, patches_t_bf16, wc_t_bf16, bc_t, p):
    smem = pltpu.MemorySpace.SMEM
    in_specs = [
        pl.BlockSpec((1, 2), lambda i: (0, 0), memory_space=smem),       # softmax(gate)
        pl.BlockSpec((B, S), lambda i: (0, 0)),                          # attention mask
        pl.BlockSpec((B, S, D_BERT), lambda i: (0, 0, 0)),               # bert embeddings
        pl.BlockSpec((D_BERT, ASR_DIM), lambda i: (0, 0)),               # w1
        pl.BlockSpec((1, ASR_DIM), lambda i: (0, 0)),                    # b1
        pl.BlockSpec((ASR_DIM, ASR_DIM), lambda i: (0, 0)),              # w2
        pl.BlockSpec((1, ASR_DIM), lambda i: (0, 0)),                    # b2
        pl.BlockSpec((ASR_DIM, N_CLASSES), lambda i: (0, 0)),            # w3
        pl.BlockSpec((1, N_CLASSES), lambda i: (0, 0)),                  # b3
        pl.BlockSpec((K_PAD, CHUNK_COLS), lambda i: (0, i)),             # im2col^T chunk (bf16)
        pl.BlockSpec((C_MID, K_PAD), lambda i: (0, 0)),                  # conv weight^T (bf16)
        pl.BlockSpec((C_MID, 1), lambda i: (0, 0)),                      # conv bias^T
        pl.BlockSpec((C_MID, N_CLASSES), lambda i: (0, 0)),              # classifier weight
        pl.BlockSpec((1, N_CLASSES), lambda i: (0, 0)),                  # classifier bias
    ]
    return pl.pallas_call(
        fused_kernel,
        out_shape=jax.ShapeDtypeStruct((B, 2 * N_CLASSES), jnp.float32),
        grid=(N_CHUNKS,),
        in_specs=in_specs,
        out_specs=pl.BlockSpec((B, 2 * N_CLASSES), lambda i: (0, 0)),
        scratch_shapes=[pltpu.VMEM((N_CHUNKS, C_MID, CHUNK_B), jnp.float32)],
        # "arbitrary": the GAP accumulator and last-step epilogue span the grid axis.
        # TODO(synk): for v7x dual-TC a "parallel" split needs per-core accumulators + a
        # separate reduce step; left sequential here for correctness on all generations.
        compiler_params=pltpu.CompilerParams(dimension_semantics=("arbitrary",)),
    )(gate, mask_f32, emb,
      p["w1"], p["b1"], p["w2"], p["b2"], p["w3"], p["b3"],
      patches_t_bf16, wc_t_bf16, bc_t, p["wcls"], p["bcls"])


# ----------------------------- glue (plain JAX) -----------------------------
def im2col_nhwc(x_nhwc, k=KSZ):
    """3x3 SAME stride-1 patch extraction. (B,H,W,C) -> (B, H*W, k*k*C)."""
    b, h, w, c = x_nhwc.shape
    xp = jnp.pad(x_nhwc, ((0, 0), (1, 1), (1, 1), (0, 0)))
    cols = []
    for dy in range(k):
        for dx in range(k):
            cols.append(xp[:, dy:dy + h, dx:dx + w, :])
    patches = jnp.concatenate(cols, axis=-1)
    return patches.reshape(b, h * w, k * k * c)


def init_params(key):
    ks = jax.random.split(key, 12)
    sc = 0.05
    return dict(
        tok_emb=sc * jax.random.normal(ks[0], (VOCAB, D_BERT), jnp.float32),
        seg_emb=sc * jax.random.normal(ks[1], (2, D_BERT), jnp.float32),
        pos_emb=sc * jax.random.normal(ks[2], (S, D_BERT), jnp.float32),
        w1=sc * jax.random.normal(ks[3], (D_BERT, ASR_DIM), jnp.float32),
        b1=sc * jax.random.normal(ks[4], (1, ASR_DIM), jnp.float32),
        w2=sc * jax.random.normal(ks[5], (ASR_DIM, ASR_DIM), jnp.float32),
        b2=sc * jax.random.normal(ks[6], (1, ASR_DIM), jnp.float32),
        w3=sc * jax.random.normal(ks[7], (ASR_DIM, N_CLASSES), jnp.float32),
        b3=sc * jax.random.normal(ks[8], (1, N_CLASSES), jnp.float32),
        wconv=sc * jax.random.normal(ks[9], (K_PATCH, C_MID), jnp.float32),
        bconv=sc * jax.random.normal(ks[10], (1, C_MID), jnp.float32),
        wcls=sc * jax.random.normal(ks[11], (C_MID, N_CLASSES), jnp.float32),
        bcls=jnp.zeros((1, N_CLASSES), jnp.float32),
        gate_logits=jnp.array([[0.3, -0.2]], jnp.float32),   # MultiTaskGate params
    )


def forward_pallas(tokens, segment_ids, attention_mask, audio_nchw, p):
    # --- text branch glue: embedding lookup (gather stays in XLA); mask goes into kernel ---
    emb = p["tok_emb"][tokens] + p["seg_emb"][segment_ids] + p["pos_emb"][None, :, :]
    mask_f32 = attention_mask.astype(jnp.float32)

    # --- audio branch glue: NCHW -> NHWC -> im2col, then lane-dense transpose + bf16 ---
    x_nhwc = jnp.transpose(audio_nchw, (0, 2, 3, 1))
    patches = im2col_nhwc(x_nhwc).reshape(B * P, K_PATCH)                # (B*P, 36) f32
    patches_t = jnp.pad(patches.T, ((0, K_PAD - K_PATCH), (0, 0)))       # (K_PAD, B*P), zero rows
    patches_t = patches_t.astype(jnp.bfloat16)
    wc_t = jnp.pad(p["wconv"].T, ((0, 0), (0, K_PAD - K_PATCH))).astype(jnp.bfloat16)  # (C_MID, K_PAD)
    bc_t = p["bconv"].T                                                  # (C_MID, 1) f32

    # --- MultiTaskGate: 2-element softmax is a constant; computed once here ---
    gate = jax.nn.softmax(p["gate_logits"], axis=-1)                     # (1, 2)

    # --- single fused Pallas kernel produces both heads as one (B, 4) slab ---
    out = fused_forward(gate, mask_f32, emb, patches_t, wc_t, bc_t, p)
    main_out = out[:, :N_CLASSES]
    asr_out = out[:, N_CLASSES:]
    return main_out, asr_out


def forward_reference(tokens, segment_ids, attention_mask, audio_nchw, p):
    emb = p["tok_emb"][tokens] + p["seg_emb"][segment_ids] + p["pos_emb"][None, :, :]
    m = attention_mask.astype(jnp.float32)[:, :, None]
    pooled = (emb * m).sum(1) / jnp.maximum(m.sum(1), 1.0)
    h = jax.nn.relu(pooled @ p["w1"] + p["b1"])
    h = jax.nn.relu(h @ p["w2"] + p["b2"])
    asr_out = h @ p["w3"] + p["b3"]

    x_nhwc = jnp.transpose(audio_nchw, (0, 2, 3, 1))
    patches = im2col_nhwc(x_nhwc)                                        # (B, P, K)
    feat = jax.nn.relu(jnp.einsum("bpk,kc->bpc", patches, p["wconv"]) + p["bconv"][None])
    pooled_a = feat.mean(axis=1)
    main_out = pooled_a @ p["wcls"] + p["bcls"]

    g = jax.nn.softmax(p["gate_logits"], axis=-1)                        # (1, 2)
    merged = jnp.stack([main_out, asr_out], axis=1)                      # (B, 2 tasks, 2 cls)
    gated = merged * g[0][None, :, None]
    return gated.sum(axis=1), asr_out


# ----------------------------- main -----------------------------------------
if __name__ == "__main__":
    key = jax.random.PRNGKey(0)
    k_tok, k_seg, k_mask, k_audio, k_param = jax.random.split(key, 5)

    tokens = jax.random.randint(k_tok, (B, S), 0, VOCAB, dtype=jnp.int32)
    segment_ids = jax.random.randint(k_seg, (B, S), 0, 2, dtype=jnp.int32)
    attention_mask = jax.random.bernoulli(k_mask, 0.9, (B, S))
    attention_mask = attention_mask.at[:, 0].set(True).astype(jnp.int32)
    audio = jax.random.normal(k_audio, (B, C_IN, H_IMG, W_IMG), jnp.float32)  # NCHW

    params = init_params(k_param)

    fwd = jax.jit(forward_pallas)
    main_out, asr_out = fwd(tokens, segment_ids, attention_mask, audio, params)
    jax.block_until_ready((main_out, asr_out))

    ref_main, ref_asr = forward_reference(tokens, segment_ids, attention_mask, audio, params)
    assert main_out.shape == (B, N_CLASSES) and asr_out.shape == (B, N_CLASSES)
    # asr path is full f32; main path uses bf16 MXU operands -> looser tolerance.
    assert jnp.allclose(asr_out, ref_asr, atol=1e-3, rtol=1e-3), "asr_output mismatch"
    assert jnp.allclose(main_out, ref_main, atol=2e-2, rtol=2e-2), "main_output mismatch"

    print("KERNEL_OK")
</pallas_src>

<mosaic_0001>
module attributes {stable_mosaic.version = 11 : i64} {
  func.func @fused_kernel(%arg0: i32, %arg1: memref<1x2xf32, #tpu.memory_space<smem>>, %arg2: memref<8x16xf32, #tpu.memory_space<vmem>>, %arg3: memref<8x16x32xf32, #tpu.memory_space<vmem>>, %arg4: memref<32x32xf32, #tpu.memory_space<vmem>>, %arg5: memref<1x32xf32, #tpu.memory_space<vmem>>, %arg6: memref<32x32xf32, #tpu.memory_space<vmem>>, %arg7: memref<1x32xf32, #tpu.memory_space<vmem>>, %arg8: memref<32x2xf32, #tpu.memory_space<vmem>>, %arg9: memref<1x2xf32, #tpu.memory_space<vmem>>, %arg10: memref<48x1024xbf16, #tpu.memory_space<vmem>>, %arg11: memref<32x48xbf16, #tpu.memory_space<vmem>>, %arg12: memref<32x1xf32, #tpu.memory_space<vmem>>, %arg13: memref<32x2xf32, #tpu.memory_space<vmem>>, %arg14: memref<1x2xf32, #tpu.memory_space<vmem>>, %arg15: memref<8x4xf32, #tpu.memory_space<vmem>>, %arg16: memref<2x32x4xf32, #tpu.memory_space<vmem>>) attributes {dimension_semantics = [#tpu.dimension_semantics<arbitrary>], iteration_bounds = array<i64: 2>, scalar_prefetch = 0 : i64, scratch_operands = 1 : i64, tpu.core_type = #tpu.core_type<tc>, window_params = [{transform_indices = @transform_0, window_bounds = array<i64: 1, 2>}, {pipeline_mode = #tpu.pipeline_mode<synchronous>, transform_indices = @transform_1, window_bounds = array<i64: 8, 16>}, {pipeline_mode = #tpu.pipeline_mode<synchronous>, transform_indices = @transform_2, window_bounds = array<i64: 8, 16, 32>}, {pipeline_mode = #tpu.pipeline_mode<synchronous>, transform_indices = @transform_3, window_bounds = array<i64: 32, 32>}, {pipeline_mode = #tpu.pipeline_mode<synchronous>, transform_indices = @transform_4, window_bounds = array<i64: 1, 32>}, {pipeline_mode = #tpu.pipeline_mode<synchronous>, transform_indices = @transform_5, window_bounds = array<i64: 32, 32>}, {pipeline_mode = #tpu.pipeline_mode<synchronous>, transform_indices = @transform_6, window_bounds = array<i64: 1, 32>}, {pipeline_mode = #tpu.pipeline_mode<synchronous>, transform_indices = @transform_7, window_bounds = array<i64: 32, 2>}, {pipeline_mode = #tpu.pipeline_mode<synchronous>, transform_indices = @transform_8, window_bounds = array<i64: 1, 2>}, {transform_indices = @transform_9, window_bounds = array<i64: 48, 1024>}, {pipeline_mode = #tpu.pipeline_mode<synchronous>, transform_indices = @transform_10, window_bounds = array<i64: 32, 48>}, {pipeline_mode = #tpu.pipeline_mode<synchronous>, transform_indices = @transform_11, window_bounds = array<i64: 32, 1>}, {pipeline_mode = #tpu.pipeline_mode<synchronous>, transform_indices = @transform_12, window_bounds = array<i64: 32, 2>}, {pipeline_mode = #tpu.pipeline_mode<synchronous>, transform_indices = @transform_13, window_bounds = array<i64: 1, 2>}, {pipeline_mode = #tpu.pipeline_mode<synchronous>, transform_indices = @transform_14, window_bounds = array<i64: 8, 4>}]} {
    %c0 = arith.constant 0 : index
    %c0_0 = arith.constant 0 : index
    %0 = vector.load %arg11[%c0, %c0_0] : memref<32x48xbf16, #tpu.memory_space<vmem>>, vector<32x48xbf16>
    %c0_1 = arith.constant 0 : index
    %c0_2 = arith.constant 0 : index
    %1 = vector.load %arg10[%c0_1, %c0_2] : memref<48x1024xbf16, #tpu.memory_space<vmem>>, vector<48x1024xbf16>
    %cst = arith.constant dense<0.000000e+00> : vector<32x1024xf32>
    %2 = tpu.matmul %0, %1, %cst {dimension_numbers = #tpu.dot_dimension_numbers<[1], [0], [0], [1], [0, 0, 1, 1], [], []>} : vector<32x48xbf16>, vector<48x1024xbf16>, vector<32x1024xf32> -> vector<32x1024xf32>
    %c0_3 = arith.constant 0 : index
    %c0_4 = arith.constant 0 : index
    %3 = vector.load %arg12[%c0_3, %c0_4] : memref<32x1xf32, #tpu.memory_space<vmem>>, vector<32x1xf32>
    %4 = vector.broadcast %3 : vector<32x1xf32> to vector<32x1024xf32>
    %5 = arith.addf %2, %4 : vector<32x1024xf32>
    %cst_5 = arith.constant 0.000000e+00 : f32
    %6 = vector.broadcast %cst_5 : f32 to vector<32x1024xf32>
    %7 = arith.maximumf %5, %6 : vector<32x1024xf32>
    %8 = vector.extract_strided_slice %7 {offsets = [0, 0], sizes = [32, 256], strides = [1, 1]} : vector<32x1024xf32> to vector<32x256xf32>
    %cst_6 = arith.constant dense<0.000000e+00> : vector<32xf32>
    %9 = vector.multi_reduction <add>, %8, %cst_6 [1] : vector<32x256xf32> to vector<32xf32>
    %10 = vector.shape_cast %9 : vector<32xf32> to vector<32x1xf32>
    %11 = vector.extract_strided_slice %7 {offsets = [0, 256], sizes = [32, 256], strides = [1, 1]} : vector<32x1024xf32> to vector<32x256xf32>
    %cst_7 = arith.constant dense<0.000000e+00> : vector<32xf32>
    %12 = vector.multi_reduction <add>, %11, %cst_7 [1] : vector<32x256xf32> to vector<32xf32>
    %13 = vector.shape_cast %12 : vector<32xf32> to vector<32x1xf32>
    %14 = vector.extract_strided_slice %7 {offsets = [0, 512], sizes = [32, 256], strides = [1, 1]} : vector<32x1024xf32> to vector<32x256xf32>
    %cst_8 = arith.constant dense<0.000000e+00> : vector<32xf32>
    %15 = vector.multi_reduction <add>, %14, %cst_8 [1] : vector<32x256xf32> to vector<32xf32>
    %16 = vector.shape_cast %15 : vector<32xf32> to vector<32x1xf32>
    %17 = vector.extract_strided_slice %7 {offsets = [0, 768], sizes = [32, 256], strides = [1, 1]} : vector<32x1024xf32> to vector<32x256xf32>
    %cst_9 = arith.constant dense<0.000000e+00> : vector<32xf32>
    %18 = vector.multi_reduction <add>, %17, %cst_9 [1] : vector<32x256xf32> to vector<32xf32>
    %19 = vector.shape_cast %18 : vector<32xf32> to vector<32x1xf32>
    %20 = tpu.concatenate %10, %13, %16, %19 in 1 : vector<32x1xf32>, vector<32x1xf32>, vector<32x1xf32>, vector<32x1xf32> -> vector<32x4xf32>
    %21 = arith.index_cast %arg0 : i32 to index
    %c0_10 = arith.constant 0 : index
    %c0_11 = arith.constant 0 : index
    %22 = vector.load %arg16[%21, %c0_10, %c0_11] : memref<2x32x4xf32, #tpu.memory_space<vmem>>, vector<1x32x4xf32>
    %23 = vector.shape_cast %22 : vector<1x32x4xf32> to vector<32x4xf32>
    %24 = vector.shape_cast %20 : vector<32x4xf32> to vector<1x32x4xf32>
    tpu.vector_store %arg16[%21, %c0_10, %c0_11], %24 {strides = array<i32>} : memref<2x32x4xf32, #tpu.memory_space<vmem>>, vector<1x32x4xf32>,
    %c1_i32 = arith.constant 1 : i32
    %25 = arith.cmpi eq, %arg0, %c1_i32 : i32
    %26 = arith.extui %25 : i1 to i32
    %c0_i32 = arith.constant 0 : i32
    %27 = arith.cmpi ne, %26, %c0_i32 : i32
    scf.if %27 {
      %c0_12 = arith.constant 0 : index
      %c0_13 = arith.constant 0 : index
      %28 = vector.load %arg2[%c0_12, %c0_13] : memref<8x16xf32, #tpu.memory_space<vmem>>, vector<8x16xf32>
      %cst_14 = arith.constant dense<0.000000e+00> : vector<8xf32>
      %29 = vector.multi_reduction <add>, %28, %cst_14 [1] : vector<8x16xf32> to vector<8xf32>
      %30 = vector.shape_cast %29 : vector<8xf32> to vector<8x1xf32>
      %cst_15 = arith.constant 1.000000e+00 : f32
      %31 = vector.broadcast %cst_15 : f32 to vector<8x1xf32>
      %32 = arith.maximumf %30, %31 : vector<8x1xf32>
      %c0_16 = arith.constant 0 : index
      %c0_17 = arith.constant 0 : index
      %c0_18 = arith.constant 0 : index
      %33 = vector.load %arg3[%c0_16, %c0_17, %c0_18] : memref<8x16x32xf32, #tpu.memory_space<vmem>>, vector<8x16x32xf32>
      %34 = vector.shape_cast %28 : vector<8x16xf32> to vector<8x16x1xf32>
      %35 = vector.broadcast %34 : vector<8x16x1xf32> to vector<8x16x32xf32>
      %36 = arith.mulf %33, %35 : vector<8x16x32xf32>
      %cst_19 = arith.constant dense<0.000000e+00> : vector<8x32xf32>
      %37 = vector.multi_reduction <add>, %36, %cst_19 [1] : vector<8x16x32xf32> to vector<8x32xf32>
      %38 = vector.broadcast %32 : vector<8x1xf32> to vector<8x32xf32>
      %39 = arith.divf %37, %38 : vector<8x32xf32>
      %c0_20 = arith.constant 0 : index
      %c0_21 = arith.constant 0 : index
      %40 = vector.load %arg4[%c0_20, %c0_21] : memref<32x32xf32, #tpu.memory_space<vmem>>, vector<32x32xf32>
      %cst_22 = arith.constant dense<0.000000e+00> : vector<8x32xf32>
      %41 = tpu.matmul %39, %40, %cst_22 {dimension_numbers = #tpu.dot_dimension_numbers<[1], [0], [0], [1], [0, 0, 1, 1], [], []>} : vector<8x32xf32>, vector<32x32xf32>, vector<8x32xf32> -> vector<8x32xf32>
      %c0_23 = arith.constant 0 : index
      %c0_24 = arith.constant 0 : index
      %42 = vector.load %arg5[%c0_23, %c0_24] : memref<1x32xf32, #tpu.memory_space<vmem>>, vector<1x32xf32>
      %43 = vector.broadcast %42 : vector<1x32xf32> to vector<8x32xf32>
      %44 = arith.addf %41, %43 : vector<8x32xf32>
      %cst_25 = arith.constant 0.000000e+00 : f32
      %45 = vector.broadcast %cst_25 : f32 to vector<8x32xf32>
      %46 = arith.maximumf %44, %45 : vector<8x32xf32>
      %c0_26 = arith.constant 0 : index
      %c0_27 = arith.constant 0 : index
      %47 = vector.load %arg6[%c0_26, %c0_27] : memref<32x32xf32, #tpu.memory_space<vmem>>, vector<32x32xf32>
      %cst_28 = arith.constant dense<0.000000e+00> : vector<8x32xf32>
      %48 = tpu.matmul %46, %47, %cst_28 {dimension_numbers = #tpu.dot_dimension_numbers<[1], [0], [0], [1], [0, 0, 1, 1], [], []>} : vector<8x32xf32>, vector<32x32xf32>, vector<8x32xf32> -> vector<8x32xf32>
      %c0_29 = arith.constant 0 : index
      %c0_30 = arith.constant 0 : index
      %49 = vector.load %arg7[%c0_29, %c0_30] : memref<1x32xf32, #tpu.memory_space<vmem>>, vector<1x32xf32>
      %50 = vector.broadcast %49 : vector<1x32xf32> to vector<8x32xf32>
      %51 = arith.addf %48, %50 : vector<8x32xf32>
      %cst_31 = arith.constant 0.000000e+00 : f32
      %52 = vector.broadcast %cst_31 : f32 to vector<8x32xf32>
      %53 = arith.maximumf %51, %52 : vector<8x32xf32>
      %c0_32 = arith.constant 0 : index
      %c0_33 = arith.constant 0 : index
      %54 = vector.load %arg8[%c0_32, %c0_33] : memref<32x2xf32, #tpu.memory_space<vmem>>, vector<32x2xf32>
      %cst_34 = arith.constant dense<0.000000e+00> : vector<8x2xf32>
      %55 = tpu.matmul %53, %54, %cst_34 {dimension_numbers = #tpu.dot_dimension_numbers<[1], [0], [0], [1], [0, 0, 1, 1], [], []>} : vector<8x32xf32>, vector<32x2xf32>, vector<8x2xf32> -> vector<8x2xf32>
      %c0_35 = arith.constant 0 : index
      %c0_36 = arith.constant 0 : index
      %56 = vector.load %arg9[%c0_35, %c0_36] : memref<1x2xf32, #tpu.memory_space<vmem>>, vector<1x2xf32>
      %57 = vector.broadcast %56 : vector<1x2xf32> to vector<8x2xf32>
      %58 = arith.addf %55, %57 : vector<8x2xf32>
      %c0_37 = arith.constant 0 : index
      %c0_38 = arith.constant 0 : index
      %c0_39 = arith.constant 0 : index
      %59 = vector.load %arg16[%c0_37, %c0_38, %c0_39] : memref<2x32x4xf32, #tpu.memory_space<vmem>>, vector<1x32x4xf32>
      %60 = vector.shape_cast %59 : vector<1x32x4xf32> to vector<32x4xf32>
      %c1 = arith.constant 1 : index
      %c0_40 = arith.constant 0 : index
      %c0_41 = arith.constant 0 : index
      %61 = vector.load %arg16[%c1, %c0_40, %c0_41] : memref<2x32x4xf32, #tpu.memory_space<vmem>>, vector<1x32x4xf32>
      %62 = vector.shape_cast %61 : vector<1x32x4xf32> to vector<32x4xf32>
      %63 = tpu.concatenate %60, %62 in 1 : vector<32x4xf32>, vector<32x4xf32> -> vector<32x8xf32>
      %64 = tpu.transpose %63, [1, 0] : vector<32x8xf32> -> vector<8x32xf32>
      %cst_42 = arith.constant 3.906250e-03 : f32
      %65 = vector.broadcast %cst_42 : f32 to vector<8x32xf32>
      %66 = arith.mulf %64, %65 : vector<8x32xf32>
      %c0_43 = arith.constant 0 : index
      %c0_44 = arith.constant 0 : index
      %67 = vector.load %arg13[%c0_43, %c0_44] : memref<32x2xf32, #tpu.memory_space<vmem>>, vector<32x2xf32>
      %cst_45 = arith.constant dense<0.000000e+00> : vector<8x2xf32>
      %68 = tpu.matmul %66, %67, %cst_45 {dimension_numbers = #tpu.dot_dimension_numbers<[1], [0], [0], [1], [0, 0, 1, 1], [], []>} : vector<8x32xf32>, vector<32x2xf32>, vector<8x2xf32> -> vector<8x2xf32>
      %c0_46 = arith.constant 0 : index
      %c0_47 = arith.constant 0 : index
      %69 = vector.load %arg14[%c0_46, %c0_47] : memref<1x2xf32, #tpu.memory_space<vmem>>, vector<1x2xf32>
      %70 = vector.broadcast %69 : vector<1x2xf32> to vector<8x2xf32>
      %71 = arith.addf %68, %70 : vector<8x2xf32>
      %c0_48 = arith.constant 0 : index
      %c0_49 = arith.constant 0 : index
      %72 = memref.load %arg1[%c0_48, %c0_49] : memref<1x2xf32, #tpu.memory_space<smem>>
      %c0_50 = arith.constant 0 : index
      %c1_51 = arith.constant 1 : index
      %73 = memref.load %arg1[%c0_50, %c1_51] : memref<1x2xf32, #tpu.memory_space<smem>>
      %74 = vector.broadcast %72 : f32 to vector<8x2xf32>
      %75 = arith.mulf %71, %74 : vector<8x2xf32>
      %76 = vector.broadcast %73 : f32 to vector<8x2xf32>
      %77 = arith.mulf %58, %76 : vector<8x2xf32>
      %78 = arith.addf %75, %77 : vector<8x2xf32>
      %c0_52 = arith.constant 0 : index
      %c0_53 = arith.constant 0 : index
      %79 = vector.load %arg15[%c0_52, %c0_53] : memref<8x4xf32, #tpu.memory_space<vmem>>, vector<8x2xf32>
      tpu.vector_store %arg15[%c0_52, %c0_53], %78 {strides = array<i32>} : memref<8x4xf32, #tpu.memory_space<vmem>>, vector<8x2xf32>,
      %c0_54 = arith.constant 0 : index
      %c2 = arith.constant 2 : index
      %80 = vector.load %arg15[%c0_54, %c2] : memref<8x4xf32, #tpu.memory_space<vmem>>, vector<8x2xf32>
      tpu.vector_store %arg15[%c0_54, %c2], %58 {strides = array<i32>} : memref<8x4xf32, #tpu.memory_space<vmem>>, vector<8x2xf32>,
    } else {
    }
    return
  }
  func.func @transform_0(%arg0: i32) -> (i32, i32) {
    %c0_i32 = arith.constant 0 : i32
    %c0_i32_0 = arith.constant 0 : i32
    %c0_i32_1 = arith.constant 0 : i32
    return %c0_i32, %c0_i32_0 : i32, i32
  }
  func.func @transform_1(%arg0: i32) -> (i32, i32) {
    %c0_i32 = arith.constant 0 : i32
    %c0_i32_0 = arith.constant 0 : i32
    %c0_i32_1 = arith.constant 0 : i32
    return %c0_i32, %c0_i32_0 : i32, i32
  }
  func.func @transform_2(%arg0: i32) -> (i32, i32, i32) {
    %c0_i32 = arith.constant 0 : i32
    %c0_i32_0 = arith.constant 0 : i32
    %c0_i32_1 = arith.constant 0 : i32
    %c0_i32_2 = arith.constant 0 : i32
    return %c0_i32, %c0_i32_0, %c0_i32_1 : i32, i32, i32
  }
  func.func @transform_3(%arg0: i32) -> (i32, i32) {
    %c0_i32 = arith.constant 0 : i32
    %c0_i32_0 = arith.constant 0 : i32
    %c0_i32_1 = arith.constant 0 : i32
    return %c0_i32, %c0_i32_0 : i32, i32
  }
  func.func @transform_4(%arg0: i32) -> (i32, i32) {
    %c0_i32 = arith.constant 0 : i32
    %c0_i32_0 = arith.constant 0 : i32
    %c0_i32_1 = arith.constant 0 : i32
    return %c0_i32, %c0_i32_0 : i32, i32
  }
  func.func @transform_5(%arg0: i32) -> (i32, i32) {
    %c0_i32 = arith.constant 0 : i32
    %c0_i32_0 = arith.constant 0 : i32
    %c0_i32_1 = arith.constant 0 : i32
    return %c0_i32, %c0_i32_0 : i32, i32
  }
  func.func @transform_6(%arg0: i32) -> (i32, i32) {
    %c0_i32 = arith.constant 0 : i32
    %c0_i32_0 = arith.constant 0 : i32
    %c0_i32_1 = arith.constant 0 : i32
    return %c0_i32, %c0_i32_0 : i32, i32
  }
  func.func @transform_7(%arg0: i32) -> (i32, i32) {
    %c0_i32 = arith.constant 0 : i32
    %c0_i32_0 = arith.constant 0 : i32
    %c0_i32_1 = arith.constant 0 : i32
    return %c0_i32, %c0_i32_0 : i32, i32
  }
  func.func @transform_8(%arg0: i32) -> (i32, i32) {
    %c0_i32 = arith.constant 0 : i32
    %c0_i32_0 = arith.constant 0 : i32
    %c0_i32_1 = arith.constant 0 : i32
    return %c0_i32, %c0_i32_0 : i32, i32
  }
  func.func @transform_9(%arg0: i32) -> (i32, i32) {
    %c0_i32 = arith.constant 0 : i32
    %c0_i32_0 = arith.constant 0 : i32
    return %c0_i32, %arg0 : i32, i32
  }
  func.func @transform_10(%arg0: i32) -> (i32, i32) {
    %c0_i32 = arith.constant 0 : i32
    %c0_i32_0 = arith.constant 0 : i32
    %c0_i32_1 = arith.constant 0 : i32
    return %c0_i32, %c0_i32_0 : i32, i32
  }
  func.func @transform_11(%arg0: i32) -> (i32, i32) {
    %c0_i32 = arith.constant 0 : i32
    %c0_i32_0 = arith.constant 0 : i32
    %c0_i32_1 = arith.constant 0 : i32
    return %c0_i32, %c0_i32_0 : i32, i32
  }
  func.func @transform_12(%arg0: i32) -> (i32, i32) {
    %c0_i32 = arith.constant 0 : i32
    %c0_i32_0 = arith.constant 0 : i32
    %c0_i32_1 = arith.constant 0 : i32
    return %c0_i32, %c0_i32_0 : i32, i32
  }
  func.func @transform_13(%arg0: i32) -> (i32, i32) {
    %c0_i32 = arith.constant 0 : i32
    %c0_i32_0 = arith.constant 0 : i32
    %c0_i32_1 = arith.constant 0 : i32
    return %c0_i32, %c0_i32_0 : i32, i32
  }
  func.func @transform_14(%arg0: i32) -> (i32, i32) {
    %c0_i32 = arith.constant 0 : i32
    %c0_i32_0 = arith.constant 0 : i32
    %c0_i32_1 = arith.constant 0 : i32
    return %c0_i32, %c0_i32_0 : i32, i32
  }
}

</mosaic_0001>

<bundles_post_ra>
// kernel: forward_pallas.1
= control target key start
LH: loop header
LB: loop body
LE: loop exit
PB: predicated region body
PF: predicated region fallthrough
CT: control target
= control target key end

     0   :  { %19 = vsyncpa [#allocation4], 0  ;;  %s2095_s29 = smov 0   ;;  %s2097_s30 = smov 0   ;;  %s2512_s0 = inlined_call_operand.vmem [shape: f32[1,2], index: 0, kind: input, shape index: {}]   ;;  %s2513_s1 = inlined_call_operand.vmem [shape: f32[8,16], index: 1, kind: input, shape index: {}]   ;;  %s2514_s2 = inlined_call_operand.vmem [shape: f32[8,16,32], index: 2, kind: input, shape index: {}]   ;;  %s2515_s3 = inlined_call_operand.vmem [shape: f32[32,32], index: 3, kind: input, shape index: {}]   ;;  %s2516_s4 = inlined_call_operand.vmem [shape: f32[1,32], index: 4, kind: input, shape index: {}]   ;;  %s2517_s5 = inlined_call_operand.vmem [shape: f32[32,32], index: 5, kind: input, shape index: {}]   ;;  %s2518_s6 = inlined_call_operand.vmem [shape: f32[1,32], index: 6, kind: input, shape index: {}]   ;;  %s2519_s7 = inlined_call_operand.vmem [shape: f32[32,2], index: 7, kind: input, shape index: {}]   ;;  %s2520_s8 = inlined_call_operand.vmem [shape: f32[1,2], index: 8, kind: input, shape index: {}]   ;;  %s2521_s9 = inlined_call_operand.vmem [shape: bf16[48,2048], index: 9, kind: input, shape index: {}]   ;;  %s2522_s10 = inlined_call_operand.vmem [shape: bf16[32,48], index: 10, kind: input, shape index: {}]   ;;  %s2523_s11 = inlined_call_operand.vmem [shape: f32[32,1], index: 11, kind: input, shape index: {}]   ;;  %s2524_s12 = inlined_call_operand.vmem [shape: f32[32,2], index: 12, kind: input, shape index: {}]   ;;  %s2525_s13 = inlined_call_operand.vmem [shape: f32[1,2], index: 13, kind: input, shape index: {}]   ;;  %s2526_s14 = inlined_call_operand.vmem [shape: f32[8,4], index: 14, kind: output, shape index: {}]  }
   0x1   :  { %s2099_s15 = smov 0  }
   0x2 LB: > { %s2111_s16 = sadd.s32 4294967295, %s2011_s15   ;;  %s2114_s17 = sadd.s32 1, %s2011_s15   ;;  %s2011_s15 = sphi %s2099_s15, %s2531_s15   ;;  %s2007_s30 = sphi %s2097_s30, %s2530_s30   ;;  %s2003_s29 = sphi %s2095_s29, %s2529_s29  }
   0x3   : > { %s218_s18 = ssub.s32 %s2011_s15, %s2114_s17  ;;  %s221_s19 = sadd.s32 1, %s2007_s30 }
   0x4   : > { %p219_p0 = scmp.eq.s32.totalorder %s218_s18, 0  ;;  %p228_p1 = scmp.ne.s32.totalorder %s2007_s30, %s2003_s29 }
   0x5   : > { %p229_p2 = scmp.eq.s32.totalorder %s2011_s15, 0  ;;  %p1764_p3 = scmp.ge.s32.totalorder %s2011_s15, 1 }
   0x6   : > { %s2124_s20 = scalar_select %p219_p0, %s2007_s30, %s221_s19  }
   0x7   : > { %p2126_p4 = por %p229_p2, %p228_p1  ;;  %p350_p5 = scmp.lt.s32.totalorder %s2011_s15, 3 }
   0x8   : > { %p1917_p6 = scmp.eq.s32.totalorder %s2111_s16, 0  ;;  %s363_s25 = sshll.u32 %s2512_s0, 4  ;;  %s364_s25 = int_to_ptr.vmem [resolvable:$true] %s363_s25 }
   0x9   : > { %p2132_p7 = pnand %p1764_p3, %p350_p5  ;;  %s1970_s26 = scalar_lea.vmem %s364_s25, 16 }
   0xa   : > { %p1971_p10 = scmp.ne.s32.totalorder %s364_s25, %s1970_s26  ;;  %p1978_p0 = scmp.lt.s32.totalorder %s364_s25, %s364_s25 }
   0xb   : > { %p1913_p8 = pneg %p2132_p7  ;;  %p1979_p1 = scmp.lt.s32.totalorder %s1970_s26, %s1970_s26 }
   0xd   : > { %p1914_p9 = pnand %p1917_p6, %p1913_p8  ;;  %p1980_p2 = por %p1979_p1, %p1978_p0 }
   0xf   : > { %p1972_p11 = pneg %p1914_p9 }
  0x11   : > { %p1973_p12 = pnand %p1972_p11, %p1971_p10 }
  0x13   : > { %p1974_p13 = pneg %p1973_p12 }
  0x15   : > { %p1981_p3 = pnand %p1980_p2, %p1974_p13 }
  0x17   : > { %1984 = shalt.err (!%p1981_p3)
}
  0x18   : > { %s2013_s27 = smov [#allocation3]   ;;  %p1766_p5 = scmp.ge.s32.totalorder %s2011_s15, 2 }
  0x19   : > { %1916 = dma.vmem_to_smem (!%p1914_p9), %s364_s25, 16, %s2013_s27, [#allocation4]  }
  0x1a   : > { %406 = sbr.rel (%p1766_p5) target bundleno = 50 (0x32), region = 68 }
  0x21   : > { %409 = sbr.rel (!%p2126_p4) target bundleno = 50 (0x32), region = 72  ;;  %s411_s28 = sand.u32 (%p2126_p4), 1, %s2007_s30  }
  0x22   : > { %s1818_s18 = sshll.u32 (%p2126_p4), %s2011_s15, 5  ;;  %s1907_s19 = smul.u32 (%p2126_p4), 192, %s411_s28 }
  0x23   : > { %s2151_s26 = scalar_lea.vmem (%p2126_p4), %s2521_s9, %s1818_s18 }
  0x24   : > { %v429_v0 = vld [vmem:[%s2151_s26] sm:$0xff] (%p2126_p4)  ;;  %v431_v1 = vld [vmem:[%s2151_s26 + $0x8] sm:$0xff] (%p2126_p4)  ;;  %v433_v2 = vld [vmem:[%s2151_s26 + $0x10] sm:$0xff] (%p2126_p4)  ;;  %s2159_s15 = scalar_lea.vmem (%p2126_p4), [#allocation5], %s1907_s19 }
  0x25   : > { %v435_v3 = vld [vmem:[%s2151_s26 + $0x18] sm:$0xff] (%p2126_p4)  ;;  %v437_v4 = vld [vmem:[%s2151_s26 + $0x40] sm:$0xff] (%p2126_p4)  ;;  %v439_v5 = vld [vmem:[%s2151_s26 + $0x48] sm:$0xff] (%p2126_p4)  ;;  %430 = vst [vmem:[%s2159_s15] sm:$0xff] (%p2126_p4), %v429_v0 }
  0x26   : > { %432 = vst [vmem:[%s2159_s15 + $0x8] sm:$0xff] (%p2126_p4), %v431_v1  ;;  %434 = vst [vmem:[%s2159_s15 + $0x10] sm:$0xff] (%p2126_p4), %v433_v2  ;;  %v441_v6 = vld [vmem:[%s2151_s26 + $0x50] sm:$0xff] (%p2126_p4)  ;;  %v443_v7 = vld [vmem:[%s2151_s26 + $0x58] sm:$0xff] (%p2126_p4) }
  0x27   : > { %436 = vst [vmem:[%s2159_s15 + $0x18] sm:$0xff] (%p2126_p4), %v435_v3  ;;  %438 = vst [vmem:[%s2159_s15 + $0x20] sm:$0xff] (%p2126_p4), %v437_v4  ;;  %v445_v8 = vld [vmem:[%s2151_s26 + $0x80] sm:$0xff] (%p2126_p4)  ;;  %v447_v9 = vld [vmem:[%s2151_s26 + $0x88] sm:$0xff] (%p2126_p4) }
  0x28   : > { %440 = vst [vmem:[%s2159_s15 + $0x28] sm:$0xff] %v439_v5  ;;  %442 = vst [vmem:[%s2159_s15 + $0x30] sm:$0xff] %v441_v6  ;;  %v449_v10 = vld [vmem:[%s2151_s26 + $0x90] sm:$0xff]  ;;  %v451_v11 = vld [vmem:[%s2151_s26 + $0x98] sm:$0xff] }
  0x29   : > { %444 = vst [vmem:[%s2159_s15 + $0x38] sm:$0xff] %v443_v7  ;;  %446 = vst [vmem:[%s2159_s15 + $0x40] sm:$0xff] %v445_v8  ;;  %v453_v12 = vld [vmem:[%s2151_s26 + $0xc0] sm:$0xff]  ;;  %v455_v13 = vld [vmem:[%s2151_s26 + $0xc8] sm:$0xff] }
  0x2a   : > { %448 = vst [vmem:[%s2159_s15 + $0x48] sm:$0xff] %v447_v9  ;;  %450 = vst [vmem:[%s2159_s15 + $0x50] sm:$0xff] %v449_v10  ;;  %v457_v14 = vld [vmem:[%s2151_s26 + $0xd0] sm:$0xff]  ;;  %v459_v15 = vld [vmem:[%s2151_s26 + $0xd8] sm:$0xff] }
  0x2b   : > { %452 = vst [vmem:[%s2159_s15 + $0x58] sm:$0xff] %v451_v11  ;;  %454 = vst [vmem:[%s2159_s15 + $0x60] sm:$0xff] %v453_v12  ;;  %v461_v16 = vld [vmem:[%s2151_s26 + $0x100] sm:$0xff]  ;;  %v463_v17 = vld [vmem:[%s2151_s26 + $0x108] sm:$0xff] }
  0x2c   : > { %456 = vst [vmem:[%s2159_s15 + $0x68] sm:$0xff] %v455_v13  ;;  %458 = vst [vmem:[%s2159_s15 + $0x70] sm:$0xff] %v457_v14  ;;  %v465_v18 = vld [vmem:[%s2151_s26 + $0x110] sm:$0xff]  ;;  %v467_v19 = vld [vmem:[%s2151_s26 + $0x118] sm:$0xff] }
  0x2d   : > { %460 = vst [vmem:[%s2159_s15 + $0x78] sm:$0xff] %v459_v15  ;;  %462 = vst [vmem:[%s2159_s15 + $0x80] sm:$0xff] %v461_v16  ;;  %v469_v20 = vld [vmem:[%s2151_s26 + $0x140] sm:$0xff]  ;;  %v471_v21 = vld [vmem:[%s2151_s26 + $0x148] sm:$0xff] }
  0x2e   : > { %464 = vst [vmem:[%s2159_s15 + $0x88] sm:$0xff] %v463_v17  ;;  %466 = vst [vmem:[%s2159_s15 + $0x90] sm:$0xff] %v465_v18  ;;  %v473_v22 = vld [vmem:[%s2151_s26 + $0x150] sm:$0xff]  ;;  %v475_v23 = vld [vmem:[%s2151_s26 + $0x158] sm:$0xff] }
  0x2f   : > { %468 = vst [vmem:[%s2159_s15 + $0x98] sm:$0xff] %v467_v19  ;;  %470 = vst [vmem:[%s2159_s15 + $0xa0] sm:$0xff] %v469_v20 }
  0x30   : > { %472 = vst [vmem:[%s2159_s15 + $0xa8] sm:$0xff] %v471_v21  ;;  %474 = vst [vmem:[%s2159_s15 + $0xb0] sm:$0xff] %v473_v22 }
  0x31   : > { %476 = vst [vmem:[%s2159_s15 + $0xb8] sm:$0xff] %v475_v23 }
  0x32 PF: > { %485 = sbr.rel (%p2132_p7) target bundleno = 1296 (0x510), region = 95 }
  0x39   : > { %1998 = dma.done.wait (%p1917_p6), [#allocation4], 16  }
  0x3a   : > { %2000 = vsyncadd (%p1917_p6), [#allocation4], 4294967280  ;;  %s492_s21 = sand.u32 1, %s2003_s29  }
  0x3b   : > { %s1908_s25 = smul.u32 192, %s492_s21 }
  0x3d   : > { %s2210_s27 = scalar_lea.vmem [#allocation5], %s1908_s25 }
  0x3e   : > { %498 = sfence }
  0x3f   : > { %v539_v24 = vld [vmem:[%s2210_s27] sm:$0xff]  ;;  %v540_v26 = vld [vmem:[%s2210_s27 + $0x8] sm:$0xff]  ;;  %v2014_v32 = vmov 0   ;;  %v541_v47 = vld [vmem:[%s2210_s27 + $0x10] sm:$0xff]  ;;  %vm717_vm0 = vcmask 392192   ;;  %vm1016_vm1 = vcmask 7168  }
  0x40   : > { %v543_v25 = vld [vmem:[%s2210_s27 + $0x20] sm:$0xff]  ;;  %v544_v28 = vld [vmem:[%s2210_s27 + $0x28] sm:$0xff]  ;;  %756 = vmatprep.mubr.bf16.mxu0 %v2014_v32  ;;  %809 = vmatprep.mubr.bf16.mxu1 %v2014_v32  ;;  %v545_v48 = vld [vmem:[%s2210_s27 + $0x30] sm:$0xff]  ;;  %s1805_s29 = sshll.u32 %s2111_s16, 5  ;;  %vm1021_vm2 = vcmask 15360   ;;  %vm1026_vm3 = vcmask 23552  }
  0x41   : > { %v1774_v27 = vcombine.high %v539_v24, %v543_v25  ;;  %v1773_v29 = vcombine.low %v539_v24, %v543_v25  ;;  %v547_v30 = vld [vmem:[%s2210_s27 + $0x40] sm:$0xff]  ;;  %v1776_v33 = vcombine.high %v540_v26, %v544_v28  ;;  %v1775_v34 = vcombine.low %v540_v26, %v544_v28  ;;  %v548_v36 = vld [vmem:[%s2210_s27 + $0x48] sm:$0xff]  ;;  %1950 = vset.pattern.permute.xlu0 %v2014_v32  ;;  %v542_v49 = vld [vmem:[%s2210_s27 + $0x18] sm:$0xff]  ;;  %s1032_s22 = scalar_lea.vmem [#allocation2], %s1805_s29  ;;  %p1806_p4 = scmp.ne.s32.totalorder %s2111_s16, 1 }
  0x42   : > { %v551_v31 = vld [vmem:[%s2210_s27 + $0x60] sm:$0xff]  ;;  %v552_v37 = vld [vmem:[%s2210_s27 + $0x68] sm:$0xff]  ;;  %1951 = vset.pattern.permute.xlu1 %v2014_v32  ;;  %v546_v50 = vld [vmem:[%s2210_s27 + $0x38] sm:$0xff]  ;;  %v1778_v53 = vcombine.high %v541_v47, %v545_v48  ;;  %v1777_v60 = vcombine.low %v541_v47, %v545_v48  ;;  %vm1033_vm4 = vcmask 31744   ;;  %vm1043_vm5 = vcmask (!%p1806_p4), 130048   ;;  %s1701_s26 = sld [smem:[#allocation3]] (!%p1806_p4) }
  0x43   : > { %v1782_v35 = vcombine.high %v547_v30, %v551_v31  ;;  %v555_v38 = vld [vmem:[%s2210_s27 + $0x80] sm:$0xff]  ;;  %724 = vmatprep.subr.bf16.mxu0 %v1774_v27  ;;  %v1784_v39 = vcombine.high %v548_v36, %v552_v37  ;;  %v556_v41 = vld [vmem:[%s2210_s27 + $0x88] sm:$0xff]  ;;  %777 = vmatprep.subr.bf16.mxu1 %v1776_v33  ;;  %v1781_v43 = vcombine.low %v547_v30, %v551_v31  ;;  %v565_v56 = vld [vmem:[%s2523_s11 + $0x10] sm:$0xff]  ;;  %vm2016_vm6 = vmmov (!%p1806_p4), 0   ;;  %s1815_s15 = sld [smem:[#allocation3 + $0x1]] (!%p1806_p4) }
  0x44   : > { %v559_v40 = vld [vmem:[%s2210_s27 + $0xa0] sm:$0xff]  ;;  %v560_v42 = vld [vmem:[%s2210_s27 + $0xa8] sm:$0xff]  ;;  %725 = vmatpush1.bf16.msra.mxu0 %v1773_v29  ;;  %778 = vmatpush1.bf16.msra.mxu1 %v1775_v34  ;;  %v1783_v44 = vcombine.low %v548_v36, %v552_v37  ;;  %v1780_v54 = vcombine.high %v542_v49, %v546_v50  ;;  %v549_v58 = vld [vmem:[%s2210_s27 + $0x50] sm:$0xff]  ;;  %v1779_v0 = vcombine.low %v542_v49, %v546_v50  ;;  %vm1168_vm7 = vcmask (!%p1806_p4), 261120  }
  0x45   : > { %726 = vmatprep.subr.bf16.mxu0 %v1782_v35  ;;  %v1790_v45 = vcombine.high %v555_v38, %v559_v40  ;;  %779 = vmatprep.subr.bf16.mxu1 %v1784_v39  ;;  %v1792_v46 = vcombine.high %v556_v41, %v560_v42  ;;  %v1789_v51 = vcombine.low %v555_v38, %v559_v40  ;;  %v563_v55 = vld [vmem:[%s2523_s11] sm:$0xff]  ;;  %v553_v59 = vld [vmem:[%s2210_s27 + $0x70] sm:$0xff]  ;;  %v550_v61 = vld [vmem:[%s2210_s27 + $0x58] sm:$0xff]  ;;  %vm1293_vm8 = vcmask (!%p1806_p4), 1041409  }
  0x46   : > { %v1791_v52 = vcombine.low %v556_v41, %v560_v42  ;;  %v1952_v57 = vld [vmem:[%s2522_s10] sm:$0xff]   ;;  %569 = vperm.xlu0 %1950, %v563_v55   ;;  %579 = vperm.xlu1 %1951, %v565_v56   ;;  %v554_v62 = vld [vmem:[%s2210_s27 + $0x78] sm:$0xff]  ;;  %v564_v63 = vld [vmem:[%s2523_s11 + $0x8] sm:$0xff]  ;;  %v1786_v1 = vcombine.high %v549_v58, %v553_v59  ;;  %v1785_v7 = vcombine.low %v549_v58, %v553_v59  ;;  %vm1296_vm9 = vcmask (!%p1806_p4), 1042434  }
  0x47   : > { %v557_v2 = vld [vmem:[%s2210_s27 + $0x90] sm:$0xff]  ;;  %v1788_v4 = vcombine.high %v550_v61, %v554_v62  ;;  %v558_v5 = vld [vmem:[%s2210_s27 + $0x98] sm:$0xff]  ;;  %v1787_v9 = vcombine.low %v550_v61, %v554_v62  ;;  %v1953_v12 = vld [vmem:[%s2522_s10 + $0x8] sm:$0xff]   ;;  %vm1299_vm10 = vcmask (!%p1806_p4), 1043459   ;;  %vm1302_vm11 = vcmask (!%p1806_p4), 1044484  }
  0x48   : > { %727 = vmatpush1.bf16.msra.mxu0 %v1781_v43  ;;  %780 = vmatpush1.bf16.msra.mxu1 %v1783_v44  ;;  %v561_v3 = vld [vmem:[%s2210_s27 + $0xb0] sm:$0xff]  ;;  %v562_v6 = vld [vmem:[%s2210_s27 + $0xb8] sm:$0xff]  ;;  %s2018_s27 = smov (!%p1806_p4), 4   ;;  %vm1305_vm12 = vcmask (!%p1806_p4), 1045509   ;;  %vm1308_vm13 = vcmask (!%p1806_p4), 1046534   ;;  %vm1311_vm14 = vcmask (!%p1806_p4), 1047559  }
  0x49   : > { %728 = vmatprep.subr.bf16.mxu0 %v1790_v45  ;;  %781 = vmatprep.subr.bf16.mxu1 %v1792_v46  ;;  %v566_v8 = vld [vmem:[%s2523_s11 + $0x18] sm:$0xff]  ;;  %v1794_v10 = vcombine.high %v557_v2, %v561_v3  ;;  %v1796_v11 = vcombine.high %v558_v5, %v562_v6  ;;  %v1793_v13 = vcombine.low %v557_v2, %v561_v3  ;;  %vm1713_vm15 = vcmask (!%p1806_p4), 31760  }
  0x4a   : > { %574 = vperm.xlu0 %1950, %v564_v63   ;;  %584 = vperm.xlu1 %1951, %v566_v8   ;;  %v1795_v14 = vcombine.low %v558_v5, %v562_v6 }
  0x4c   : > { %729 = vmatpush1.bf16.msra.mxu0 %v1789_v51  ;;  %782 = vmatpush1.bf16.msra.mxu1 %v1791_v52 }
  0x4d   : > { %830 = vmatprep.subr.bf16.mxu0 %v1778_v53  ;;  %883 = vmatprep.subr.bf16.mxu1 %v1780_v54 }
  0x4f   : > { %1797 = vmatmul.mubr.msk.bf16.vlgmr.msra.gmra.mrb[0].mxu0 %vm717_vm0, %v1952_v57  ;;  %1799 = vmatmul.mubr.msk.bf16.vlgmr.msra.gmra.mrb[0].mxu1 %vm717_vm0, %v1952_v57 }
  0x50   : > { %831 = vmatpush1.bf16.msra.mxu0 %v1777_v60  ;;  %884 = vmatpush1.bf16.msra.mxu1 %v1779_v0 }
  0x51   : > { %766 = vmatprep.mubr.bf16.mxu0 %v2014_v32  ;;  %819 = vmatprep.mubr.bf16.mxu1 %v2014_v32 }
  0x52   : > { %832 = vmatprep.subr.bf16.mxu0 %v1786_v1  ;;  %885 = vmatprep.subr.bf16.mxu1 %v1788_v4 }
  0x54   : > { %833 = vmatpush1.bf16.msra.mxu0 %v1785_v7  ;;  %886 = vmatpush1.bf16.msra.mxu1 %v1787_v9 }
  0x55   : > { %834 = vmatprep.subr.bf16.mxu0 %v1794_v10  ;;  %887 = vmatprep.subr.bf16.mxu1 %v1796_v11 }
  0x57   : > { %1798 = vmatmul.mubr.msk.bf16.gmra.mrb[4].mxu0 %vm717_vm0, %v1953_v12  ;;  %1800 = vmatmul.mubr.msk.bf16.gmra.mrb[4].mxu1 %vm717_vm0, %v1953_v12 }
  0x58   : > { %835 = vmatpush1.bf16.msra.mxu0 %v1793_v13  ;;  %888 = vmatpush1.bf16.msra.mxu1 %v1795_v14 }
  0x59   : > { %862 = vmatprep.mubr.bf16.mxu0 %v2014_v32  ;;  %915 = vmatprep.mubr.bf16.mxu1 %v2014_v32 }
  0x5f   : > { %1801 = vmatmul.mubr.msk.bf16.vlgmr.msra.gmra.mrb[8].mxu0 %vm717_vm0, %v1952_v57  ;;  %1803 = vmatmul.mubr.msk.bf16.vlgmr.msra.gmra.mrb[8].mxu1 %vm717_vm0, %v1952_v57 }
  0x60   : > { %872 = vmatprep.mubr.bf16.mxu0 %v2014_v32  ;;  %925 = vmatprep.mubr.bf16.mxu1 %v2014_v32 }
  0x67   : > { %1802 = vmatmul.mubr.msk.bf16.gmra.mrb[12].mxu0 %vm717_vm0, %v1953_v12  ;;  %1804 = vmatmul.mubr.msk.bf16.gmra.mrb[12].mxu1 %vm717_vm0, %v1953_v12 }
  0xc5   : > { %v2272_v15 = vpop.permute.xlu0 %569  ;;  %v2274_v16 = vpop.permute.xlu1 %579 }
  0xc9   : > { %v2276_v18 = vpop.permute.xlu0 %574  ;;  %v2286_v45 = vpop.permute.xlu1 %584 }
 0x122   : > { %v758_v17 = vpop.f32.mrb[0].mxu0  ;;  %v811_v20 = vpop.f32.mrb[0].mxu1 }
 0x123   : > { %v759_v19 = vadd.f32 %v758_v17, %v2272_v15  ;;  %v760_v21 = vpop.f32.mrb[1].mxu0  ;;  %v812_v22 = vadd.f32 %v811_v20, %v2272_v15  ;;  %v813_v24 = vpop.f32.mrb[1].mxu1 }
 0x124   : > { %v761_v23 = vadd.f32 %v760_v21, %v2272_v15  ;;  %v762_v25 = vpop.f32.mrb[2].mxu0  ;;  %v814_v27 = vadd.f32 %v813_v24, %v2272_v15  ;;  %v815_v29 = vpop.f32.mrb[2].mxu1 }
 0x125   : > { %v936_v26 = vmax.f32 %v759_v19, 0.0  ;;  %v763_v28 = vadd.f32 %v762_v25, %v2276_v18  ;;  %v764_v30 = vpop.f32.mrb[3].mxu0  ;;  %v938_v31 = vmax.f32 %v812_v22, 0.0  ;;  %v816_v33 = vadd.f32 %v815_v29, %v2276_v18  ;;  %v817_v35 = vpop.f32.mrb[3].mxu1 }
 0x126   : > { %v937_v32 = vmax.f32 %v761_v23, 0.0  ;;  %v765_v34 = vadd.f32 %v764_v30, %v2276_v18  ;;  %v939_v36 = vmax.f32 %v814_v27, 0.0  ;;  %v818_v38 = vadd.f32 %v817_v35, %v2276_v18 }
 0x127   : > { %v944_v37 = vmax.f32 %v763_v28, 0.0  ;;  %v946_v39 = vmax.f32 %v816_v33, 0.0 }
 0x128   : > { %v945_v40 = vmax.f32 %v765_v34, 0.0  ;;  %v968_v41 = vadd.f32 %v937_v32, %v936_v26  ;;  %v947_v42 = vmax.f32 %v818_v38, 0.0  ;;  %v980_v43 = vadd.f32 %v939_v36, %v938_v31 }
 0x12a   : > { %v768_v44 = vpop.f32.mrb[4].mxu0  ;;  %969 = vadd.xlane.f32.xlu0 %v968_v41  ;;  %v971_v46 = vadd.f32 %v945_v40, %v944_v37  ;;  %v821_v47 = vpop.f32.mrb[4].mxu1  ;;  %981 = vadd.xlane.f32.xlu1 %v980_v43  ;;  %v983_v50 = vadd.f32 %v947_v42, %v946_v39 }
 0x12b   : > { %v769_v48 = vadd.f32 %v768_v44, %v2274_v16  ;;  %v770_v49 = vpop.f32.mrb[5].mxu0  ;;  %v822_v51 = vadd.f32 %v821_v47, %v2274_v16  ;;  %v823_v53 = vpop.f32.mrb[5].mxu1 }
 0x12c   : > { %v771_v52 = vadd.f32 %v770_v49, %v2274_v16  ;;  %v772_v54 = vpop.f32.mrb[6].mxu0  ;;  %v824_v56 = vadd.f32 %v823_v53, %v2274_v16  ;;  %v825_v58 = vpop.f32.mrb[6].mxu1 }
 0x12d   : > { %v952_v55 = vmax.f32 %v769_v48, 0.0  ;;  %v773_v57 = vadd.f32 %v772_v54, %v2286_v45  ;;  %v774_v59 = vpop.f32.mrb[7].mxu0  ;;  %v954_v60 = vmax.f32 %v822_v51, 0.0  ;;  %v826_v62 = vadd.f32 %v825_v58, %v2286_v45  ;;  %v827_v0 = vpop.f32.mrb[7].mxu1 }
 0x12e   : > { %v953_v61 = vmax.f32 %v771_v52, 0.0  ;;  %v775_v63 = vadd.f32 %v774_v59, %v2286_v45  ;;  %984 = vadd.xlane.f32.xlu0 %v983_v50  ;;  %v955_v1 = vmax.f32 %v824_v56, 0.0  ;;  %v828_v3 = vadd.f32 %v827_v0, %v2286_v45  ;;  %972 = vadd.xlane.f32.xlu1 %v971_v46 }
 0x12f   : > { %v960_v2 = vmax.f32 %v773_v57, 0.0  ;;  %v962_v4 = vmax.f32 %v826_v62, 0.0 }
 0x130   : > { %v961_v5 = vmax.f32 %v775_v63, 0.0  ;;  %v974_v6 = vadd.f32 %v953_v61, %v952_v55  ;;  %v963_v7 = vmax.f32 %v828_v3, 0.0  ;;  %v986_v8 = vadd.f32 %v955_v1, %v954_v60 }
 0x132   : > { %v864_v9 = vpop.f32.mrb[8].mxu0  ;;  %975 = vadd.xlane.f32.xlu0 %v974_v6  ;;  %v977_v10 = vadd.f32 %v961_v5, %v960_v2  ;;  %v917_v12 = vpop.f32.mrb[8].mxu1  ;;  %987 = vadd.xlane.f32.xlu1 %v986_v8  ;;  %v989_v14 = vadd.f32 %v963_v7, %v962_v4 }
 0x133   : > { %v865_v11 = vadd.f32 %v864_v9, %v2272_v15  ;;  %v866_v13 = vpop.f32.mrb[9].mxu0  ;;  %v918_v17 = vadd.f32 %v917_v12, %v2272_v15  ;;  %v919_v20 = vpop.f32.mrb[9].mxu1 }
 0x134   : > { %v867_v19 = vadd.f32 %v866_v13, %v2272_v15  ;;  %v868_v21 = vpop.f32.mrb[10].mxu0  ;;  %v920_v23 = vadd.f32 %v919_v20, %v2272_v15  ;;  %v921_v25 = vpop.f32.mrb[10].mxu1 }
 0x135   : > { %v940_v22 = vmax.f32 %v865_v11, 0.0  ;;  %v869_v24 = vadd.f32 %v868_v21, %v2276_v18  ;;  %v870_v26 = vpop.f32.mrb[11].mxu0  ;;  %v942_v27 = vmax.f32 %v918_v17, 0.0  ;;  %v922_v29 = vadd.f32 %v921_v25, %v2276_v18  ;;  %v923_v31 = vpop.f32.mrb[11].mxu1 }
 0x136   : > { %v941_v28 = vmax.f32 %v867_v19, 0.0  ;;  %v871_v30 = vadd.f32 %v870_v26, %v2276_v18  ;;  %978 = vadd.xlane.f32.xlu0 %v977_v10  ;;  %v943_v32 = vmax.f32 %v920_v23, 0.0  ;;  %v924_v34 = vadd.f32 %v923_v31, %v2276_v18 }
 0x137   : > { %v948_v33 = vmax.f32 %v869_v24, 0.0  ;;  %v950_v35 = vmax.f32 %v922_v29, 0.0 }
 0x138   : > { %v949_v36 = vmax.f32 %v871_v30, 0.0  ;;  %v992_v37 = vadd.f32 %v941_v28, %v940_v22  ;;  %v951_v15 = vmax.f32 %v924_v34, 0.0  ;;  %v1004_v38 = vadd.f32 %v943_v32, %v942_v27  ;;  %v1042_v34 = vld [vmem:[%s2513_s1] sm:$0xff] (!%p1806_p4) }
 0x13a   : > { %v874_v39 = vpop.f32.mrb[12].mxu0  ;;  %993 = vadd.xlane.f32.xlu1 %v992_v37  ;;  %990 = vadd.xlane.f32.xlu0 %v989_v14  ;;  %v995_v40 = vadd.f32 %v949_v36, %v948_v33  ;;  %v927_v42 = vpop.f32.mrb[12].mxu1  ;;  %v1007_v44 = vadd.f32 %v951_v15, %v950_v35  ;;  %v1064_v35 = vlaneseq (!%p1806_p4)  ;;  %v1044_v36 = vsel (!%p1806_p4), %vm1043_vm5, %v1042_v34, 0.0 }
 0x13b   : > { %v875_v41 = vadd.f32 %v874_v39, %v2274_v16  ;;  %v876_v43 = vpop.f32.mrb[13].mxu0  ;;  %v928_v46 = vadd.f32 %v927_v42, %v2274_v16  ;;  %v929_v48 = vpop.f32.mrb[13].mxu1 }
 0x13c   : > { %v877_v47 = vadd.f32 %v876_v43, %v2274_v16  ;;  %v878_v18 = vpop.f32.mrb[14].mxu0  ;;  %v930_v50 = vadd.f32 %v929_v48, %v2274_v16  ;;  %v931_v52 = vpop.f32.mrb[14].mxu1  ;;  %v1065_v37 = vshrl.u32 (!%p1806_p4), %v1064_v35, 7 }
 0x13d   : > { %v956_v49 = vmax.f32 %v875_v41, 0.0  ;;  %v879_v51 = vadd.f32 %v878_v18, %v2286_v45  ;;  %v880_v53 = vpop.f32.mrb[15].mxu0  ;;  %v958_v54 = vmax.f32 %v928_v46, 0.0  ;;  %v932_v56 = vadd.f32 %v931_v52, %v2286_v45  ;;  %v933_v58 = vpop.f32.mrb[15].mxu1 }
 0x13e   : > { %v957_v55 = vmax.f32 %v877_v47, 0.0  ;;  %v881_v57 = vadd.f32 %v880_v53, %v2286_v45  ;;  %1005 = vadd.xlane.f32.xlu1 %v1004_v38  ;;  %996 = vadd.xlane.f32.xlu0 %v995_v40  ;;  %v959_v59 = vmax.f32 %v930_v50, 0.0  ;;  %v934_v61 = vadd.f32 %v933_v58, %v2286_v45  ;;  %v1273_v53 = vld [vmem:[%s2515_s3] sm:$0xff] (!%p1806_p4) }
 0x13f   : > { %v964_v60 = vmax.f32 %v879_v51, 0.0  ;;  %v966_v62 = vmax.f32 %v932_v56, 0.0  ;;  %v1077_v15 = vsub.s32 (!%p1806_p4), 1, %v1065_v37  ;;  %v1088_v38 = vsub.s32 (!%p1806_p4), 2, %v1065_v37  ;;  %v1275_v56 = vld [vmem:[%s2515_s3 + $0x10] sm:$0xff] (!%p1806_p4) }
 0x140   : > { %v965_v63 = vmax.f32 %v881_v57, 0.0  ;;  %v998_v16 = vadd.f32 %v957_v55, %v956_v49  ;;  %v967_v0 = vmax.f32 %v934_v61, 0.0  ;;  %v1010_v1 = vadd.f32 %v959_v59, %v958_v54  ;;  %v1274_v54 = vld [vmem:[%s2515_s3 + $0x8] sm:$0xff] (!%p1806_p4)  ;;  %v1276_v57 = vld [vmem:[%s2515_s3 + $0x18] sm:$0xff] (!%p1806_p4) }
 0x141   : > { %v1078_v39 = vrot.slane (!%p1806_p4), %v1042_v34, %v1077_v15  ;;  %v1089_v40 = vrot.slane (!%p1806_p4), %v1042_v34, %v1088_v38  ;;  %v1066_v41 = vsub.s32 (!%p1806_p4), 0, %v1065_v37  ;;  %v1099_v43 = vsub.s32 (!%p1806_p4), 3, %v1065_v37 }
 0x142   : > { %999 = vadd.xlane.f32.xlu1 %v998_v16  ;;  %1008 = vadd.xlane.f32.xlu0 %v1007_v44  ;;  %v1001_v2 = vadd.f32 %v965_v63, %v964_v60  ;;  %v1013_v3 = vadd.f32 %v967_v0, %v966_v62  ;;  %v1110_v44 = vsub.s32 (!%p1806_p4), 4, %v1065_v37  ;;  %v1121_v48 = vsub.s32 (!%p1806_p4), 5, %v1065_v37  ;;  %v1386_v63 = vld [vmem:[%s2517_s5] sm:$0xff] (!%p1806_p4)  ;;  %v1387_v16 = vld [vmem:[%s2517_s5 + $0x8] sm:$0xff] (!%p1806_p4) }
 0x143   : > { %v1067_v42 = vrot.slane (!%p1806_p4), %v1042_v34, %v1066_v41  ;;  %v1100_v46 = vrot.slane (!%p1806_p4), %v1042_v34, %v1099_v43  ;;  %v1132_v49 = vsub.s32 (!%p1806_p4), 6, %v1065_v37  ;;  %v1143_v51 = vsub.s32 (!%p1806_p4), 7, %v1065_v37 }
 0x144   : > { %v1111_v47 = vrot.slane (!%p1806_p4), %v1042_v34, %v1110_v44  ;;  %v1122_v18 = vrot.slane (!%p1806_p4), %v1042_v34, %v1121_v48  ;;  %v1884_v55 = vpack.c.bf16 (!%p1806_p4), %v1274_v54, %v1273_v53  ;;  %v2015_v58 = vmov (!%p1806_p4), 0.0|0.0  }
 0x145   : > { %v1133_v50 = vrot.slane (!%p1806_p4), %v1042_v34, %v1132_v49  ;;  %v1144_v52 = vrot.slane (!%p1806_p4), %v1042_v34, %v1143_v51  ;;  %1883 = vmatprep.subr.bf16.mxu0 (!%p1806_p4), %v2015_v58  ;;  %v2017_v59 = vmov (!%p1806_p4), 0.0   ;;  %v1887_v60 = vpack.c.bf16 (!%p1806_p4), %v1276_v57, %v1275_v56  ;;  %1889 = vmatprep.subr.bf16.mxu1 (!%p1806_p4), %v2015_v58 }
 0x146   : > { %1011 = vadd.xlane.f32.xlu1 %v1010_v1  ;;  %1002 = vadd.xlane.f32.xlu0 %v1001_v2  ;;  %v1890_v2 = vpack.c.bf16 (!%p1806_p4), %v1387_v16, %v1386_v63 }
 0x147   : > { %1847 = vmatprep.mubr.msk.f32.mxu0 (!%p1806_p4), %vm2016_vm6, %v2017_v59  ;;  %1885 = vmatpush3.bf16.msra.mxu0 (!%p1806_p4), %v1884_v55  ;;  %v1059_v55 = vld [vmem:[%s2514_s2 + $0x58] sm:$0xff] (!%p1806_p4) }
 0x148   : > { %1886 = vmatprep.subr.bf16.mxu0 (!%p1806_p4), %v2015_v58  ;;  %1858 = vmatprep.mubr.msk.f32.mxu1 (!%p1806_p4), %vm2016_vm6, %v2017_v59 }
 0x149   : > { %1891 = vmatpush3.bf16.msra.mxu1 (!%p1806_p4), %v1890_v2 }
 0x14a   : > { %1014 = vadd.xlane.f32.xlu0 %v1013_v3  ;;  %1892 = vmatprep.subr.bf16.mxu1 (!%p1806_p4), %v2015_v58 }
 0x14b   : > { %1888 = vmatpush3.bf16.msra.mxu0 (!%p1806_p4), %v1887_v60  ;;  %v1058_v60 = vld [vmem:[%s2514_s2 + $0x50] sm:$0xff] (!%p1806_p4) }
 0x14c   : > { %1895 = vmatprep.subr.bf16.mxu0 (!%p1806_p4), %v2015_v58 }
 0x14e   : > { %1045 = vadd.xlane.f32.xlu0 (!%p1806_p4), %v1044_v36 }
 0x157   : > { %1084 = vbcast.lane.b32.xlu1 (!%p1806_p4), %v1078_v39, 264 }
 0x15b   : > { %1091 = vbcast.lane.b32.xlu1 (!%p1806_p4), %v1089_v40, 256 }
 0x15f   : > { %1095 = vbcast.lane.b32.xlu1 (!%p1806_p4), %v1089_v40, 264 }
 0x163   : > { %1069 = vbcast.lane.b32.xlu1 (!%p1806_p4), %v1067_v42, 256 }
 0x164   : > { %1080 = vbcast.lane.b32.xlu0 (!%p1806_p4), %v1078_v39, 256  ;;  %v1057_v39 = vld [vmem:[%s2514_s2 + $0x48] sm:$0xff] (!%p1806_p4) }
 0x167   : > { %1073 = vbcast.lane.b32.xlu1 (!%p1806_p4), %v1067_v42, 264  ;;  %v1056_v42 = vld [vmem:[%s2514_s2 + $0x40] sm:$0xff] (!%p1806_p4) }
 0x168   : > { %1113 = vbcast.lane.b32.xlu0 (!%p1806_p4), %v1111_v47, 256 }
 0x16b   : > { %1102 = vbcast.lane.b32.xlu1 (!%p1806_p4), %v1100_v46, 256 }
 0x16c   : > { %1124 = vbcast.lane.b32.xlu0 (!%p1806_p4), %v1122_v18, 256 }
 0x16f   : > { %1106 = vbcast.lane.b32.xlu1 (!%p1806_p4), %v1100_v46, 264 }
 0x170   : > { %1135 = vbcast.lane.b32.xlu0 (!%p1806_p4), %v1133_v50, 256 }
 0x173   : > { %1117 = vbcast.lane.b32.xlu1 (!%p1806_p4), %v1111_v47, 264 }
 0x174   : > { %1146 = vbcast.lane.b32.xlu0 (!%p1806_p4), %v1144_v52, 256 }
 0x177   : > { %1128 = vbcast.lane.b32.xlu1 (!%p1806_p4), %v1122_v18, 264 }
 0x17b   : > { %1139 = vbcast.lane.b32.xlu1 (!%p1806_p4), %v1133_v50, 264 }
 0x17f   : > { %1150 = vbcast.lane.b32.xlu1 (!%p1806_p4), %v1144_v52, 264 }
 0x1b7   : > { %v970_v4 = vpop.xlane.xlu0 %969  ;;  %v982_v5 = vpop.xlane.xlu1 %981 }
 0x1b8   : > { %v1017_v12 = vsel %vm1016_vm1, %v970_v4, %v982_v5  ;;  %v1053_v5 = vld [vmem:[%s2514_s2 + $0x28] sm:$0xff] (!%p1806_p4) }
 0x1bb   : > { %v985_v6 = vpop.xlane.xlu0 %984  ;;  %v973_v7 = vpop.xlane.xlu1 %972 }
 0x1bc   : > { %v1018_v20 = vsel %vm1016_vm1, %v973_v7, %v985_v6  ;;  %v1052_v6 = vld [vmem:[%s2514_s2 + $0x20] sm:$0xff] (!%p1806_p4) }
 0x1bf   : > { %v976_v8 = vpop.xlane.xlu0 %975  ;;  %v988_v9 = vpop.xlane.xlu1 %987 }
 0x1c0   : > { %v1019_v25 = vsel %vm1016_vm1, %v976_v8, %v988_v9 }
 0x1c3   : > { %v979_v45 = vpop.xlane.xlu0 %978 }
 0x1c7   : > { %v994_v10 = vpop.xlane.xlu1 %993  ;;  %v991_v11 = vpop.xlane.xlu0 %990 }
 0x1c8   : > { %v1022_v13 = vsel %vm1021_vm2, %v1017_v12, %v994_v10  ;;  %v1020_v30 = vsel %vm1016_vm1, %v979_v45, %v991_v11  ;;  %v1048_v11 = vld [vmem:[%s2514_s2] sm:$0xff] (!%p1806_p4)  ;;  %v1049_v12 = vld [vmem:[%s2514_s2 + $0x8] sm:$0xff] (!%p1806_p4) }
 0x1cb   : > { %v1006_v14 = vpop.xlane.xlu1 %1005  ;;  %v997_v17 = vpop.xlane.xlu0 %996 }
 0x1cc   : > { %v1027_v19 = vsel %vm1026_vm3, %v1022_v13, %v1006_v14  ;;  %v1023_v21 = vsel %vm1021_vm2, %v1018_v20, %v997_v17 }
 0x1cd   : > { %1034 = vst.msk [vmem:[%s1032_s22] sm:$0xff] %vm1033_vm4, %v1027_v19 }
 0x1cf   : > { %v1000_v22 = vpop.xlane.xlu1 %999  ;;  %v1009_v23 = vpop.xlane.xlu0 %1008 }
 0x1d0   : > { %v1028_v24 = vsel %vm1026_vm3, %v1023_v21, %v1009_v23  ;;  %v1024_v26 = vsel %vm1021_vm2, %v1019_v25, %v1000_v22  ;;  %v1054_v23 = vld [vmem:[%s2514_s2 + $0x30] sm:$0xff] (!%p1806_p4)  ;;  %v1051_v25 = vld [vmem:[%s2514_s2 + $0x18] sm:$0xff] (!%p1806_p4) }
 0x1d1   : > { %1035 = vst.msk [vmem:[%s1032_s22 + $0x8] sm:$0xff] %vm1033_vm4, %v1028_v24 }
 0x1d3   : > { %v1012_v27 = vpop.xlane.xlu1 %1011  ;;  %v1003_v28 = vpop.xlane.xlu0 %1002  ;;  %1041 = sbr.rel (%p1806_p4) target bundleno = 1296 (0x510), region = 107 }
 0x1d4   : > { %v1029_v29 = vsel %vm1026_vm3, %v1024_v26, %v1012_v27  ;;  %v1025_v31 = vsel %vm1021_vm2, %v1020_v30, %v1003_v28 }
 0x1d5   : > { %1036 = vst.msk [vmem:[%s1032_s22 + $0x10] sm:$0xff] %vm1033_vm4, %v1029_v29  ;;  %v1055_v29 = vld [vmem:[%s2514_s2 + $0x38] sm:$0xff] (!%p1806_p4) }
 0x1d7   : > { %v1015_v32 = vpop.xlane.xlu0 %1014  ;;  %v1085_v3 = vpop.permute.xlu1 (!%p1806_p4), %1084 }
 0x1d8   : > { %v1030_v33 = vsel %vm1026_vm3, %v1025_v31, %v1015_v32  ;;  %v1050_v31 = vld [vmem:[%s2514_s2 + $0x10] sm:$0xff] (!%p1806_p4)  ;;  %v1155_v32 = vmul.f32 (!%p1806_p4), %v1085_v3, %v1051_v25 }
 0x1d9   : > { %1037 = vst.msk [vmem:[%s1032_s22 + $0x18] sm:$0xff] %vm1033_vm4, %v1030_v33  ;;  %s2019_s22 = smov (!%p1806_p4), 2  }
 0x1da   : > { %v1179_v43 = vsel %vm1168_vm7, %v1155_v32, 0.0  ;;  %v1063_v32 = vld [vmem:[%s2514_s2 + $0x78] sm:$0xff] }
 0x1db   : > { %v1092_v4 = vpop.permute.xlu1 %1091  ;;  %v1046_v27 = vpop.xlane.xlu0 %1045 }
 0x1dc   : > { %v1156_v9 = vmul.f32 %v1092_v4, %v1052_v6  ;;  %v2388_v35 = vmax.f32 %v1046_v27, 1.0 }
 0x1de   : > { %v1187_v13 = vsel %vm1168_vm7, %v1156_v9, 0.0  ;;  %v1242_v18 = vrot.slane %v2388_v35, 1  ;;  %v1244_v6 = vrot.slane %v2388_v35, 3  ;;  %v1247_v27 = vrot.slane %v2388_v35, 6 }
 0x1df   : > { %v1096_v7 = vpop.permute.xlu1 %1095  ;;  %v1081_v37 = vpop.permute.xlu0 %1080 }
 0x1e0   : > { %v1560_v61 = vld [vmem:[#allocation2 + $0x20] sm:$0xff]  ;;  %v1561_v62 = vld [vmem:[#allocation2 + $0x28] sm:$0xff]  ;;  %v1562_v0 = vld [vmem:[#allocation2 + $0x30] sm:$0xff]  ;;  %v1157_v8 = vmul.f32 %v1096_v7, %v1053_v5  ;;  %v1154_v38 = vmul.f32 %v1081_v37, %v1050_v31  ;;  %1954 = vrcp.f32 %v1242_v18 }
 0x1e1   : > { %1568 = vrot.lane.b32.xlu0 %v1560_v61, %s2018_s27  ;;  %1570 = vrot.lane.b32.xlu1 %v1561_v62, %s2018_s27  ;;  %v1563_v1 = vld [vmem:[#allocation2 + $0x38] sm:$0xff]  ;;  %1956 = vrcp.f32 %v2388_v35 }
 0x1e2   : > { %v1188_v10 = vsel %vm1168_vm7, %v1157_v8, 0.0  ;;  %v1178_v47 = vsel %vm1168_vm7, %v1154_v38, 0.0  ;;  %v1061_v8 = vld [vmem:[%s2514_s2 + $0x68] sm:$0xff] }
 0x1e3   : > { %v1070_v45 = vpop.permute.xlu1 %1069  ;;  %v1189_v14 = vadd.f32 %v1188_v10, %v1187_v13  ;;  %v1180_v49 = vadd.f32 %v1179_v43, %v1178_v47  ;;  %v1114_v51 = vpop.permute.xlu0 %1113 }
 0x1e4   : > { %v1152_v19 = vmul.f32 %v1070_v45, %v1048_v11  ;;  %v1160_v54 = vmul.f32 %v1114_v51, %v1056_v42  ;;  %v1245_v45 = vrot.slane %v2388_v35, 4 }
 0x1e5   : > { %1572 = vrot.lane.b32.xlu0 %v1562_v0, %s2018_s27  ;;  %1574 = vrot.lane.b32.xlu1 %v1563_v1, %s2018_s27  ;;  %v1190_v22 = vrot.slane %v1189_v14, 4  ;;  %v1181_v56 = vrot.slane %v1180_v49, 4  ;;  %v1243_v0 = vrot.slane %v2388_v35, 2 }
 0x1e6   : > { %v1169_v26 = vsel %vm1168_vm7, %v1152_v19, 0.0  ;;  %v1205_v63 = vsel %vm1168_vm7, %v1160_v54, 0.0 }
 0x1e7   : > { %v1074_v17 = vpop.permute.xlu1 %1073  ;;  %v1191_v33 = vadd.f32 %v1190_v22, %v1189_v14  ;;  %v1182_v1 = vadd.f32 %v1181_v56, %v1180_v49  ;;  %v1125_v4 = vpop.permute.xlu0 %1124  ;;  %v1246_v14 = vrot.slane %v2388_v35, 5  ;;  %1958 = vrcp.f32 %v1243_v0 }
 0x1e8   : > { %v1153_v20 = vmul.f32 %v1074_v17, %v1049_v12  ;;  %v1162_v7 = vmul.f32 %v1125_v4, %v1058_v60  ;;  %v1060_v12 = vld [vmem:[%s2514_s2 + $0x60] sm:$0xff]  ;;  %1960 = vrcp.f32 %v1244_v6 }
 0x1e9   : > { %v1192_v44 = vrot.slane %v1191_v33, 2  ;;  %v1183_v9 = vrot.slane %v1182_v1, 2  ;;  %1962 = vrcp.f32 %v1245_v45 }
 0x1ea   : > { %v1170_v21 = vsel %vm1168_vm7, %v1153_v20, 0.0  ;;  %v1214_v17 = vsel %vm1168_vm7, %v1162_v7, 0.0  ;;  %1964 = vrcp.f32 %v1246_v14 }
 0x1eb   : > { %v1103_v24 = vpop.permute.xlu1 %1102  ;;  %v1171_v28 = vadd.f32 %v1170_v21, %v1169_v26  ;;  %v2408_v61 = vadd.f32 %v1192_v44, %v1191_v33  ;;  %v1184_v20 = vadd.f32 %v1183_v9, %v1182_v1  ;;  %v1062_v33 = vld [vmem:[%s2514_s2 + $0x70] sm:$0xff]  ;;  %1966 = vrcp.f32 %v1247_v27 }
 0x1ec   : > { %v1158_v30 = vmul.f32 %v1103_v24, %v1054_v23  ;;  %v1136_v24 = vpop.permute.xlu0 %1135 }
 0x1ed   : > { %v1172_v15 = vrot.slane %v1171_v28, 4  ;;  %v1164_v26 = vmul.f32 %v1136_v24, %v1060_v12  ;;  %v1194_v47 = vrot.slane %v2408_v61, 1 }
 0x1ee   : > { %v1196_v40 = vsel %vm1168_vm7, %v1158_v30, 0.0 }
 0x1ef   : > { %v1107_v34 = vpop.permute.xlu1 %1106  ;;  %v1173_v52 = vadd.f32 %v1172_v15, %v1171_v28  ;;  %v1185_v28 = vrot.slane %v1184_v20, 1 }
 0x1f0   : > { %v1159_v36 = vmul.f32 %v1107_v34, %v1055_v29 }
 0x1f1   : > { %v1174_v5 = vrot.slane %v1173_v52, 2  ;;  %v1186_v15 = vadd.f32 %v1185_v28, %v1184_v20 }
 0x1f2   : > { %v1197_v41 = vsel %vm1168_vm7, %v1159_v36, 0.0  ;;  %v1223_v36 = vsel %vm1168_vm7, %v1164_v26, 0.0 }
 0x1f3   : > { %v1198_v46 = vadd.f32 %v1197_v41, %v1196_v40  ;;  %v1118_v48 = vpop.permute.xlu1 %1117  ;;  %v1175_v25 = vadd.f32 %v1174_v5, %v1173_v52  ;;  %v1147_v41 = vpop.permute.xlu0 %1146 }
 0x1f4   : > { %v1161_v50 = vmul.f32 %v1118_v48, %v1057_v39  ;;  %v1166_v44 = vmul.f32 %v1147_v41, %v1062_v33  ;;  %v1389_v41 = vld [vmem:[%s2517_s5 + $0x18] sm:$0xff] }
 0x1f5   : > { %v1199_v53 = vrot.slane %v1198_v46, 4  ;;  %v1176_v42 = vrot.slane %v1175_v25, 1 }
 0x1f6   : > { %v1206_v57 = vsel %vm1168_vm7, %v1161_v50, 0.0 }
 0x1f7   : > { %v1200_v62 = vadd.f32 %v1199_v53, %v1198_v46  ;;  %v1129_v16 = vpop.permute.xlu1 %1128  ;;  %v1207_v2 = vadd.f32 %v1206_v57, %v1205_v63  ;;  %v1955_v46 = vpop.eup %1954  ;;  %v1232_v53 = vsel %vm1168_vm7, %v1166_v44, 0.0  ;;  %v1248_v57 = vrot.slane %v2388_v35, 7  ;;  %v1555_v44 = vld [vmem:[#allocation2] sm:$0xff] }
 0x1f8   : > { %v1163_v3 = vmul.f32 %v1129_v16, %v1059_v55  ;;  %v1957_v49 = vpop.eup %1956  ;;  %v1260_v51 = vmul.f32 %v1955_v46, %v1186_v15  ;;  %v1195_v16 = vadd.f32 %v1194_v47, %v2408_v61  ;;  %v1556_v46 = vld [vmem:[#allocation2 + $0x8] sm:$0xff] }
 0x1f9   : > { %v1208_v10 = vrot.slane %v1207_v2, 4  ;;  %v1201_v13 = vrot.slane %v1200_v62, 2  ;;  %v1959_v60 = vpop.eup %1958  ;;  %1968 = vrcp.f32 %v1248_v57 }
 0x1fa   : > { %v1215_v11 = vsel %vm1168_vm7, %v1163_v3, 0.0  ;;  %v1292_v4 = vrot.slane %v1260_v51, 7 }
 0x1fb   : > { %v1140_v19 = vpop.permute.xlu1 %1139  ;;  %v1209_v21 = vadd.f32 %v1208_v10, %v1207_v2  ;;  %v1216_v22 = vadd.f32 %v1215_v11, %v1214_v17  ;;  %v1202_v34 = vadd.f32 %v1201_v13, %v1200_v62  ;;  %v1177_v62 = vadd.f32 %v1176_v42, %v1175_v25  ;;  %v1961_v2 = vpop.eup %1960 }
 0x1fc   : > { %v1165_v23 = vmul.f32 %v1140_v19, %v1061_v8  ;;  %v1262_v8 = vmul.f32 %v1959_v60, %v1195_v16  ;;  %v1963_v9 = vpop.eup %1962  ;;  %v1807_v60 = vld [vmem:[%s2516_s4] ss:$0 sm:$0xff] }
 0x1fd   : > { %v1210_v29 = vrot.slane %v1209_v21, 2  ;;  %v1217_v30 = vrot.slane %v1216_v22, 4  ;;  %v1203_v50 = vrot.slane %v1202_v34, 1  ;;  %v1258_v45 = vmul.f32 %v1957_v49, %v1177_v62  ;;  %v1965_v12 = vpop.eup %1964  ;;  %v1472_v49 = vld [vmem:[%s2519_s7 + $0x8] sm:$0xff]  ;;  %v1617_v62 = vld [vmem:[%s2524_s12] sm:$0xff] }
 0x1fe   : > { %v1224_v31 = vsel %vm1168_vm7, %v1165_v23, 0.0  ;;  %v1967_v17 = vpop.eup %1966 }
 0x1ff   : > { %v1151_v37 = vpop.permute.xlu1 %1150  ;;  %v1211_v38 = vadd.f32 %v1210_v29, %v1209_v21  ;;  %v1218_v39 = vadd.f32 %v1217_v30, %v1216_v22  ;;  %v1225_v40 = vadd.f32 %v1224_v31, %v1223_v36  ;;  %v1204_v3 = vadd.f32 %v1203_v50, %v1202_v34 }
 0x200   : > { %v1167_v43 = vmul.f32 %v1151_v37, %v1063_v32  ;;  %v1294_v14 = vsel %vm1293_vm8, %v1292_v4, %v1258_v45  ;;  %v1295_v21 = vrot.slane %v1262_v8, 6  ;;  %v1473_v4 = vld [vmem:[%s2519_s7 + $0x10] sm:$0xff]  ;;  %v1809_v45 = vld [vmem:[%s2518_s6] ss:$0 sm:$0xff] }
 0x201   : > { %v1219_v48 = vrot.slane %v1218_v39, 2  ;;  %v1226_v18 = vrot.slane %v1225_v40, 4  ;;  %v1212_v54 = vrot.slane %v1211_v38, 1  ;;  %v1264_v13 = vmul.f32 %v1961_v2, %v1204_v3 }
 0x202   : > { %v1233_v52 = vsel %vm1168_vm7, %v1167_v43, 0.0  ;;  %v1297_v25 = vsel %vm1296_vm9, %v1295_v21, %v1294_v14 }
 0x203   : > { %v1220_v55 = vadd.f32 %v1219_v48, %v1218_v39  ;;  %v1227_v56 = vadd.f32 %v1226_v18, %v1225_v40  ;;  %v1234_v63 = vadd.f32 %v1233_v52, %v1232_v53  ;;  %v1213_v6 = vadd.f32 %v1212_v54, %v1211_v38  ;;  %v1969_v32 = vpop.eup %1968  ;;  %v1388_v40 = vld [vmem:[%s2517_s5 + $0x10] sm:$0xff]  ;;  %v1471_v18 = vld [vmem:[%s2519_s7] sm:$0xff] }
 0x204   : > { %v1298_v26 = vrot.slane %v1264_v13, 5  ;;  %v1893_v42 = vpack.c.bf16 %v1389_v41, %v1388_v40  ;;  %v1896_v50 = vpack.c.bf16 %v1472_v49, %v1471_v18  ;;  %v1557_v52 = vld [vmem:[#allocation2 + $0x10] sm:$0xff] }
 0x205   : > { %v1221_v0 = vrot.slane %v1220_v55, 1  ;;  %v1228_v1 = vrot.slane %v1227_v56, 2  ;;  %v1235_v5 = vrot.slane %v1234_v63, 4  ;;  %v1266_v19 = vmul.f32 %v1963_v9, %v1213_v6  ;;  %v1619_v6 = vld [vmem:[%s2524_s12 + $0x10] sm:$0xff] }
 0x206   : > { %v1300_v31 = vsel %vm1299_vm10, %v1298_v26, %v1297_v25  ;;  %1894 = vmatpush3.bf16.msra.mxu1 %v1893_v42 }
 0x207   : > { %v1229_v7 = vadd.f32 %v1228_v1, %v1227_v56  ;;  %v1222_v10 = vadd.f32 %v1221_v0, %v1220_v55  ;;  %v1236_v35 = vadd.f32 %v1235_v5, %v1234_v63  ;;  %v1301_v28 = vrot.slane %v1266_v19, 4  ;;  %1901 = vmatprep.subr.bf16.mxu1 %v2015_v58  ;;  %v1558_v55 = vld [vmem:[#allocation2 + $0x18] sm:$0xff]  ;;  %v1618_v63 = vld [vmem:[%s2524_s12 + $0x8] sm:$0xff]  ;;  %v1811_v19 = vld [vmem:[%s2520_s8] ss:$0 sm:$0xff] }
 0x208   : > { %v1902_v2 = vpack.c.bf16 %v1618_v63, %v1617_v62  ;;  %v1474_v5 = vld [vmem:[%s2519_s7 + $0x18] sm:$0xff] }
 0x209   : > { %v1230_v11 = vrot.slane %v1229_v7, 1  ;;  %v1237_v61 = vrot.slane %v1236_v35, 2  ;;  %v1268_v22 = vmul.f32 %v1965_v12, %v1222_v10  ;;  %v1303_v36 = vsel %vm1302_vm11, %v1301_v28, %v1300_v31 }
 0x20a   : > { %v1899_v8 = vpack.c.bf16 %v1474_v5, %v1473_v4 }
 0x20b   : > { %v1231_v20 = vadd.f32 %v1230_v11, %v1229_v7  ;;  %v1238_v23 = vadd.f32 %v1237_v61, %v1236_v35  ;;  %v1304_v29 = vrot.slane %v1268_v22, 3  ;;  %v1813_v61 = vld [vmem:[%s2525_s13] ss:$0 sm:$0xff]  ;;  %v1705_v22 = vstv %s1815_s15 }
 0x20d   : > { %v1270_v24 = vmul.f32 %v1967_v17, %v1231_v20  ;;  %v1239_v27 = vrot.slane %v1238_v23, 1  ;;  %v1306_v37 = vsel %vm1305_vm12, %v1304_v29, %v1303_v36  ;;  %v1703_v20 = vstv %s1701_s26 }
 0x20f   : > { %v1240_v30 = vadd.f32 %v1239_v27, %v1238_v23  ;;  %v1307_v33 = vrot.slane %v1270_v24, 2 }
 0x211   : > { %v1272_v34 = vmul.f32 %v1969_v32, %v1240_v30  ;;  %v1309_v38 = vsel %vm1308_vm13, %v1307_v33, %v1306_v37 }
 0x213   : > { %v1310_v15 = vrot.slane %v1272_v34, 1 }
 0x215   : > { %v1312_v39 = vsel %vm1311_vm14, %v1310_v15, %v1309_v38 }
 0x216   : > { %1848 = vmatmul.mubr.msk.f32.vlgmr.msra.gmra.mrb[0].mxu0 %vm1168_vm7, %v1312_v39 }
 0x217   : > { %1869 = vmatprep.mubr.msk.f32.mxu0 %vm2016_vm6, %v2017_v59  ;;  %1897 = vmatpush3.bf16.msra.mxu0 %v1896_v50 }
 0x218   : > { %1898 = vmatprep.subr.bf16.mxu0 %v2015_v58 }
 0x21b   : > { %1900 = vmatpush3.bf16.msra.mxu0 %v1899_v8 }
 0x253   : > { %v1569_v43 = vpop.permute.xlu0 %1568  ;;  %v1571_v47 = vpop.permute.xlu1 %1570 }
 0x254   : > { %v1580_v48 = vsel %vm1033_vm4, %v1555_v44, %v1569_v43  ;;  %v1581_v51 = vsel %vm1033_vm4, %v1556_v46, %v1571_v47 }
 0x255   : > { %1584 = vxpose.xlu0.b32.start [1/4] (short) (narrow) %v1580_v48, 8 }
 0x257   : > { %v1573_v53 = vpop.permute.xlu0 %1572  ;;  %v1575_v56 = vpop.permute.xlu1 %1574 }
 0x258   : > { %v1582_v54 = vsel %vm1033_vm4, %v1557_v52, %v1573_v53  ;;  %v1583_v57 = vsel %vm1033_vm4, %v1558_v55, %v1575_v56 }
 0x259   : > { %1585 = vxpose.xlu0.b32.cont [2/4] (short) (narrow) %v1581_v51, 8 }
 0x25d   : > { %1586 = vxpose.xlu0.b32.cont [3/4] (short) (narrow) %v1582_v54, 8 }
 0x261   : > { %1587 = vxpose.xlu0.b32.end [4/4] (short) (narrow) %v1583_v57, 8 }
 0x2d5   : > { %v1600_v7 = vpop.trf.xlu0 }
 0x2e9   : > { %v1381_v16 = vpop.f32.mrb[0].mxu0 }
 0x2ea   : > { %v1382_v0 = vadd.f32 %v1807_v60, %v1381_v16  ;;  %v1849_v1 = vpop.f32.mrb[1].mxu0 }
 0x2ec   : > { %v1385_v3 = vmax.f32 %v1382_v0, 0.0 }
 0x2ee   : > { %1859 = vmatmul.mubr.msk.f32.vlgmr.msra.gmra.mrb[0].mxu1 %vm1168_vm7, %v1385_v3 }
 0x2ef   : > { %1903 = vmatpush3.bf16.msra.mxu1 %v1902_v2  ;;  %1880 = vmatprep.mubr.msk.f32.mxu1 %vm2016_vm6, %v2017_v59  ;;  %v1620_v59 = vld [vmem:[%s2524_s12 + $0x18] sm:$0xff] }
 0x2f0   : > { %1904 = vmatprep.subr.bf16.mxu1 %v2015_v58  ;;  %v1905_v9 = vpack.c.bf16 %v1620_v59, %v1619_v6  ;;  %v1616_v58 = vmul.f32 0.00390625, %v1600_v7 }
 0x2f3   : > { %1906 = vmatpush3.bf16.msra.mxu1 %v1905_v9 }
 0x2f6   : > { %1881 = vmatmul.mubr.msk.f32.vlgmr.msra.gmra.mrb[2].mxu1 %vm1168_vm7, %v1616_v58 }
 0x3c1   : > { %v1466_v10 = vpop.f32.mrb[0].mxu1 }
 0x3c2   : > { %v1467_v35 = vadd.f32 %v1809_v45, %v1466_v10  ;;  %v1860_v11 = vpop.f32.mrb[1].mxu1 }
 0x3c4   : > { %v1470_v12 = vmax.f32 %v1467_v35, 0.0 }
 0x3c6   : > { %1870 = vmatmul.mubr.msk.f32.vlgmr.msra.gmra.mrb[2].mxu0 %vm1168_vm7, %v1470_v12 }
 0x3c9   : > { %v1697_v13 = vpop.f32.mrb[2].mxu1 }
 0x3ca   : > { %v1882_v14 = vpop.f32.mrb[3].mxu1  ;;  %v1698_v17 = vadd.f32 %v1813_v61, %v1697_v13 }
 0x3cc   : > { %v1704_v24 = vmul.f32 %v1703_v20, %v1698_v17 }
 0x499   : > { %v1551_v21 = vpop.f32.mrb[2].mxu0 }
 0x49a   : > { %v1552_v23 = vadd.f32 %v1811_v19, %v1551_v21  ;;  %v1871_v25 = vpop.f32.mrb[3].mxu0 }
 0x49c   : > { %v1706_v26 = vmul.f32 %v1705_v22, %v1552_v23  ;;  %1710 = vrot.lane.b32.xlu1 %v1552_v23, %s2019_s22 }
 0x49e   : > { %v1707_v27 = vadd.f32 %v1706_v26, %v1704_v24 }
 0x4a0   : > { %1708 = vst.msk [vmem:[%s2526_s14] sm:$0xff] %vm1021_vm2, %v1707_v27 }
 0x50e   : > { %v1711_v28 = vpop.permute.xlu1 %1710 }
 0x50f   : > { %1714 = vst.msk [vmem:[%s2526_s14] sm:$0xff] %vm1713_vm15, %v1711_v28 }
 0x510 PF: > { %p22_p6 = scmp.ge.s32.totalorder %s2114_s17, 4   ;;  %s2529_s29 = smov %s2007_s30 }
 0x511   : > { %s2530_s30 = smov %s2124_s20  ;;  %s2531_s15 = smov %s2114_s17 }
 0x512   :  { %24 = sbr.rel (!%p22_p6) target bundleno = 2 (0x2), region = 141 }
 0x519   :  { %1726 = vsyncpa [#allocation4], 1 }
 0x51a   :  { %1728 = vsyncpa [#allocation4 + $0x1], 1 }

</bundles_post_ra>
